<compile_context>
chip_gen: v6e
topology: v6e:2x2x1
jax: 0.10.0
libtpu: 0.0.40
codegen_flags: <defaults>
</compile_context>

<pallas_src>
import functools

import jax
import jax.numpy as jnp
from jax import lax
from jax.experimental import pallas as pl
from jax.experimental.pallas import tpu as pltpu

EPS = 1e-5
_NEG = -1e30                      # finite "-inf" for masking (avoids inf-inf NaN paths)
_GELU_C = 0.7978845608028654      # sqrt(2/pi)


def _layernorm(v, scale, shift):
    mean = jnp.mean(v, axis=-1, keepdims=True)
    var = jnp.mean((v - mean) ** 2, axis=-1, keepdims=True)   # unbiased=False
    return (v - mean) * lax.rsqrt(var + EPS) * scale + shift


def _gelu_tanh(v):
    return 0.5 * v * (1.0 + jnp.tanh(_GELU_C * (v + 0.044715 * v * v * v)))


def gpt_block_kernel(x_ref,
                     ln1s_ref, ln1b_ref,
                     wqkv_ref, bqkv_ref,      # (H, D, 3*hd), (H, 1, 3*hd)
                     wo_ref, bo_ref,          # (D, D), (1, D)
                     ln2s_ref, ln2b_ref,
                     w1_ref, b1_ref,          # (Cn, D, CH), (Cn, 1, CH)
                     w2_ref, b2_ref,          # (Cn, CH, D), (1, D)
                     o_ref,
                     k_scr, v_scr, ctx_scr, ctx2_scr,
                     *, num_heads, kv_block):
    T, D = x_ref.shape
    H = num_heads
    hd = D // H
    TK = kv_block
    num_kv = T // TK
    num_ch = w1_ref.shape[0]
    mm = wqkv_ref.dtype                       # MXU operand dtype (bf16 or f32)

    x = x_ref[...].astype(jnp.float32)        # (T, D) rows of one sequence

    # ---- sublayer 1: LayerNorm -> causal MHA (flash-style KV tiling) -> residual ----
    h1 = _layernorm(x, ln1s_ref[...], ln1b_ref[...]).astype(mm)

    # causal index grids, hoisted out of both loops
    q_pos = lax.broadcasted_iota(jnp.int32, (T, TK), 0)
    k_pos = lax.broadcasted_iota(jnp.int32, (T, TK), 1)
    inv_scale = 1.0 / (hd ** 0.5)

    def head_body(h, carry):
        # per-head fused QKV projection (full-depth K = D matmul)
        qkv_h = jnp.dot(h1, wqkv_ref[h],
                        preferred_element_type=jnp.float32) + bqkv_ref[h]   # (T, 3*hd)
        q_h = (qkv_h[:, :hd] * inv_scale).astype(mm)                        # scale folded into q
        k_scr[...] = qkv_h[:, hd:2 * hd].astype(mm)
        v_scr[...] = qkv_h[:, 2 * hd:].astype(mm)

        def kv_step(i, mla):
            m, l, acc = mla
            start = pl.multiple_of(i * TK, TK)
            kt = k_scr[pl.ds(start, TK), :]                                 # (TK, hd)
            vt = v_scr[pl.ds(start, TK), :]
            s = jnp.einsum('qd,kd->qk', q_h, kt,
                           preferred_element_type=jnp.float32)              # (T, TK)
            s = jnp.where(q_pos >= k_pos + start, s, _NEG)
            m_new = jnp.maximum(m, jnp.max(s, axis=-1, keepdims=True))
            alpha = jnp.exp(m - m_new)
            p = jnp.exp(s - m_new)
            l_new = alpha * l + jnp.sum(p, axis=-1, keepdims=True)
            acc_new = alpha * acc + jnp.dot(p.astype(mm), vt,
                                            preferred_element_type=jnp.float32)
            return m_new, l_new, acc_new

        m0 = jnp.full((T, 1), _NEG, jnp.float32)
        l0 = jnp.zeros((T, 1), jnp.float32)
        a0 = jnp.zeros((T, hd), jnp.float32)
        m, l, acc = lax.fori_loop(0, num_kv, kv_step, (m0, l0, a0))
        ctx_scr[h] = (acc * pl.reciprocal(l, approx=True)).astype(mm)       # (T, hd)
        return carry

    lax.fori_loop(0, H, head_body, 0)

    # assemble a lane-contiguous (T, D) context so the output projection runs at full MXU depth
    for hh in range(H):                       # static: H small slice copies
        ctx2_scr[:, hh * hd:(hh + 1) * hd] = ctx_scr[hh]
    attn = jnp.dot(ctx2_scr[...], wo_ref[...],
                   preferred_element_type=jnp.float32) + bo_ref[...]
    x1 = x + attn                             # dropoutShortcut = identity (eval)

    # ---- sublayer 2: LayerNorm -> FeedForward tiled over the 4D hidden dim -> residual ----
    h2 = _layernorm(x1, ln2s_ref[...], ln2b_ref[...]).astype(mm)

    def ff_step(c, acc):
        ff1 = jnp.dot(h2, w1_ref[c], preferred_element_type=jnp.float32) + b1_ref[c]
        g = _gelu_tanh(ff1)
        return acc + jnp.dot(g.astype(mm), w2_ref[c], preferred_element_type=jnp.float32)

    ff = lax.fori_loop(0, num_ch, ff_step, jnp.zeros((T, D), jnp.float32))
    o_ref[...] = (x1 + ff + b2_ref[...]).astype(o_ref.dtype)


def gpt_transformer_block(x, params, *, num_heads,
                          matmul_dtype=jnp.bfloat16, kv_block=512, ff_block=512):
    (ln1s, ln1b, wq, bq, wk, bk, wv, bv, wo, bo,
     ln2s, ln2b, w1, b1, w2, b2) = params
    B, T, D = x.shape
    H = num_heads
    hd = D // H
    Dff = w1.shape[1]
    mm = matmul_dtype
    f32 = jnp.float32

    TK = min(kv_block, T)
    if T % TK != 0 or TK % 16 != 0:           # keep dynamic sublane slices tile-aligned
        TK = T
    CH = min(ff_block, Dff)
    if Dff % CH != 0:
        CH = Dff
    num_ch = Dff // CH

    # per-head fused QKV weight (H, D, 3*hd) + bias (H, 1, 3*hd); FF weights chunked over 4D.
    wqkv = jnp.concatenate([wq.reshape(D, H, hd), wk.reshape(D, H, hd),
                            wv.reshape(D, H, hd)], axis=2)
    wqkv = jnp.transpose(wqkv, (1, 0, 2)).astype(mm)
    bqkv = jnp.concatenate([bq.reshape(1, H, hd), bk.reshape(1, H, hd),
                            bv.reshape(1, H, hd)], axis=2)
    bqkv = jnp.transpose(bqkv, (1, 0, 2)).astype(f32)
    w1r = jnp.transpose(w1.reshape(D, num_ch, CH), (1, 0, 2)).astype(mm)
    b1r = jnp.transpose(b1.reshape(1, num_ch, CH), (1, 0, 2)).astype(f32)
    w2r = w2.reshape(num_ch, CH, D).astype(mm)

    ops = [x.reshape(B * T, D),               # lane-dense row slab
           ln1s.astype(f32), ln1b.astype(f32),
           wqkv, bqkv,
           wo.astype(mm), bo.astype(f32),
           ln2s.astype(f32), ln2b.astype(f32),
           w1r, b1r, w2r, b2.astype(f32)]

    def resident(a):                          # grid-invariant weights: constant index map
        nd = a.ndim
        return pl.BlockSpec(a.shape, lambda b, _nd=nd: (0,) * _nd)

    in_specs = [pl.BlockSpec((T, D), lambda b: (b, 0))] + [resident(a) for a in ops[1:]]
    out_specs = pl.BlockSpec((T, D), lambda b: (b, 0))

    flops = int(2 * B * T * D * 3 * D + 4 * B * H * T * T * hd
                + 2 * B * T * D * D + 4 * B * T * D * Dff)
    transcendentals = int(B * H * T * T + B * T * Dff)
    bytes_accessed = int(8 * B * T * D
                         + sum(int(a.size) * a.dtype.itemsize for a in ops[1:]))

    kernel = functools.partial(gpt_block_kernel, num_heads=H, kv_block=TK)
    out = pl.pallas_call(
        kernel,
        out_shape=jax.ShapeDtypeStruct((B * T, D), x.dtype),
        grid_spec=pltpu.PrefetchScalarGridSpec(
            num_scalar_prefetch=0,
            grid=(B,),                        # one sequence (T rows) per step
            in_specs=in_specs,
            out_specs=out_specs,
            scratch_shapes=[
                pltpu.VMEM((T, hd), mm),      # K of current head
                pltpu.VMEM((T, hd), mm),      # V of current head
                pltpu.VMEM((H, T, hd), mm),   # per-head context
                pltpu.VMEM((T, D), mm),       # assembled context for the out projection
            ]),
        compiler_params=pltpu.CompilerParams(
            dimension_semantics=("parallel",),        # megacore split on v7x
            vmem_limit_bytes=48 * 1024 * 1024),
        cost_estimate=pl.CostEstimate(flops=flops,
                                      transcendentals=transcendentals,
                                      bytes_accessed=bytes_accessed),
    )(*ops)
    return out.reshape(B, T, D)


def _reference(x, params, num_heads):
    (ln1s, ln1b, wq, bq, wk, bk, wv, bv, wo, bo, ln2s, ln2b, w1, b1, w2, b2) = params
    B, T, D = x.shape
    hd = D // num_heads

    def ln(v, s, b):
        m = jnp.mean(v, axis=-1, keepdims=True)
        var = jnp.mean((v - m) ** 2, axis=-1, keepdims=True)
        return (v - m) / jnp.sqrt(var + EPS) * s + b

    h = ln(x, ln1s, ln1b)
    q = (h @ wq + bq).reshape(B, T, num_heads, hd).transpose(0, 2, 1, 3)
    k = (h @ wk + bk).reshape(B, T, num_heads, hd).transpose(0, 2, 1, 3)
    v = (h @ wv + bv).reshape(B, T, num_heads, hd).transpose(0, 2, 1, 3)
    scores = jnp.einsum("bhqd,bhkd->bhqk", q, k) / jnp.sqrt(float(hd))
    mask = jnp.tril(jnp.ones((T, T), bool))
    scores = jnp.where(mask, scores, -jnp.inf)
    p = jax.nn.softmax(scores, axis=-1)
    ctx = jnp.einsum("bhqk,bhkd->bhqd", p, v).transpose(0, 2, 1, 3).reshape(B, T, D)
    x1 = x + (ctx @ wo + bo)
    h2 = ln(x1, ln2s, ln2b)
    ff1 = h2 @ w1 + b1
    g = 0.5 * ff1 * (1.0 + jnp.tanh(jnp.sqrt(2.0 / jnp.pi) * (ff1 + 0.044715 * ff1 ** 3)))
    return x1 + (g @ w2 + b2)


if __name__ == "__main__":
    # config: EMBEDDING_DIMENSION=128, N_HEADS=4, CONTEXT_LENGTH=32, dropout rates=0, QKV_BIAS=True
    B, T, D, H = 2, 32, 128, 4
    key = jax.random.PRNGKey(0)
    ks = jax.random.split(key, 16)

    def w(k, shape, scale=0.05):
        return (scale * jax.random.normal(k, shape)).astype(jnp.float32)

    params = [
        jnp.ones((1, D), jnp.float32),        # ln1 scale
        jnp.zeros((1, D), jnp.float32),       # ln1 shift
        w(ks[0], (D, D)), w(ks[1], (1, D)),   # Wq, bq
        w(ks[2], (D, D)), w(ks[3], (1, D)),   # Wk, bk
        w(ks[4], (D, D)), w(ks[5], (1, D)),   # Wv, bv
        w(ks[6], (D, D)), w(ks[7], (1, D)),   # W_out, b_out
        jnp.ones((1, D), jnp.float32),        # ln2 scale
        jnp.zeros((1, D), jnp.float32),       # ln2 shift
        w(ks[8], (D, 4 * D)), w(ks[9], (1, 4 * D)),    # FF layer 1
        w(ks[10], (4 * D, D)), w(ks[11], (1, D)),      # FF layer 2
    ]

    x = jax.random.normal(ks[12], (B, T, D), jnp.float32)
    ref = _reference(x, params, H)

    # small kv/ff blocks so the flash-KV and FF-chunk loops run >1 iteration in the toy test
    out32 = jax.block_until_ready(
        gpt_transformer_block(x, params, num_heads=H, matmul_dtype=jnp.float32,
                              kv_block=16, ff_block=256))
    assert out32.shape == (B, T, D)
    err32 = float(jnp.max(jnp.abs(out32 - ref)))
    assert jnp.allclose(out32, ref, atol=1e-2, rtol=1e-2), err32

    out16 = jax.block_until_ready(
        gpt_transformer_block(x, params, num_heads=H, matmul_dtype=jnp.bfloat16,
                              kv_block=16, ff_block=256))
    err16 = float(jnp.max(jnp.abs(out16 - ref)))
    assert jnp.allclose(out16, ref, atol=3e-2, rtol=3e-2), err16

    print("KERNEL_OK")
</pallas_src>

<mosaic_0001>
module attributes {stable_mosaic.version = 11 : i64} {
  func.func @gpt_block_kernel(%arg0: i32, %arg1: memref<32x128xf32, #tpu.memory_space<vmem>>, %arg2: memref<1x128xf32, #tpu.memory_space<vmem>>, %arg3: memref<1x128xf32, #tpu.memory_space<vmem>>, %arg4: memref<4x128x96xf32, #tpu.memory_space<vmem>>, %arg5: memref<4x1x96xf32, #tpu.memory_space<vmem>>, %arg6: memref<128x128xf32, #tpu.memory_space<vmem>>, %arg7: memref<1x128xf32, #tpu.memory_space<vmem>>, %arg8: memref<1x128xf32, #tpu.memory_space<vmem>>, %arg9: memref<1x128xf32, #tpu.memory_space<vmem>>, %arg10: memref<2x128x256xf32, #tpu.memory_space<vmem>>, %arg11: memref<2x1x256xf32, #tpu.memory_space<vmem>>, %arg12: memref<2x256x128xf32, #tpu.memory_space<vmem>>, %arg13: memref<1x128xf32, #tpu.memory_space<vmem>>, %arg14: memref<32x128xf32, #tpu.memory_space<vmem>>, %arg15: memref<32x32xf32, #tpu.memory_space<vmem>>, %arg16: memref<32x32xf32, #tpu.memory_space<vmem>>, %arg17: memref<4x32x32xf32, #tpu.memory_space<vmem>>, %arg18: memref<32x128xf32, #tpu.memory_space<vmem>>) attributes {dimension_semantics = [#tpu.dimension_semantics<parallel>], iteration_bounds = array<i64: 2>, scalar_prefetch = 0 : i64, scratch_operands = 4 : i64, tpu.core_type = #tpu.core_type<tc>, window_params = [{transform_indices = @transform_0, window_bounds = array<i64: 32, 128>}, {pipeline_mode = #tpu.pipeline_mode<synchronous>, transform_indices = @transform_1, window_bounds = array<i64: 1, 128>}, {pipeline_mode = #tpu.pipeline_mode<synchronous>, transform_indices = @transform_2, window_bounds = array<i64: 1, 128>}, {pipeline_mode = #tpu.pipeline_mode<synchronous>, transform_indices = @transform_3, window_bounds = array<i64: 4, 128, 96>}, {pipeline_mode = #tpu.pipeline_mode<synchronous>, transform_indices = @transform_4, window_bounds = array<i64: 4, 1, 96>}, {pipeline_mode = #tpu.pipeline_mode<synchronous>, transform_indices = @transform_5, window_bounds = array<i64: 128, 128>}, {pipeline_mode = #tpu.pipeline_mode<synchronous>, transform_indices = @transform_6, window_bounds = array<i64: 1, 128>}, {pipeline_mode = #tpu.pipeline_mode<synchronous>, transform_indices = @transform_7, window_bounds = array<i64: 1, 128>}, {pipeline_mode = #tpu.pipeline_mode<synchronous>, transform_indices = @transform_8, window_bounds = array<i64: 1, 128>}, {pipeline_mode = #tpu.pipeline_mode<synchronous>, transform_indices = @transform_9, window_bounds = array<i64: 2, 128, 256>}, {pipeline_mode = #tpu.pipeline_mode<synchronous>, transform_indices = @transform_10, window_bounds = array<i64: 2, 1, 256>}, {pipeline_mode = #tpu.pipeline_mode<synchronous>, transform_indices = @transform_11, window_bounds = array<i64: 2, 256, 128>}, {pipeline_mode = #tpu.pipeline_mode<synchronous>, transform_indices = @transform_12, window_bounds = array<i64: 1, 128>}, {transform_indices = @transform_13, window_bounds = array<i64: 32, 128>}]} {
    %c0 = arith.constant 0 : index
    %c0_0 = arith.constant 0 : index
    %0 = vector.load %arg1[%c0, %c0_0] : memref<32x128xf32, #tpu.memory_space<vmem>>, vector<32x128xf32>
    %c0_1 = arith.constant 0 : index
    %c0_2 = arith.constant 0 : index
    %1 = vector.load %arg2[%c0_1, %c0_2] : memref<1x128xf32, #tpu.memory_space<vmem>>, vector<1x128xf32>
    %c0_3 = arith.constant 0 : index
    %c0_4 = arith.constant 0 : index
    %2 = vector.load %arg3[%c0_3, %c0_4] : memref<1x128xf32, #tpu.memory_space<vmem>>, vector<1x128xf32>
    %cst = arith.constant dense<0.000000e+00> : vector<32xf32>
    %3 = vector.multi_reduction <add>, %0, %cst [1] : vector<32x128xf32> to vector<32xf32>
    %4 = vector.shape_cast %3 : vector<32xf32> to vector<32x1xf32>
    %cst_5 = arith.constant 1.280000e+02 : f32
    %5 = vector.broadcast %cst_5 : f32 to vector<32x1xf32>
    %6 = arith.divf %4, %5 : vector<32x1xf32>
    %7 = vector.broadcast %6 : vector<32x1xf32> to vector<32x128xf32>
    %8 = arith.subf %0, %7 : vector<32x128xf32>
    %9 = arith.mulf %8, %8 : vector<32x128xf32>
    %cst_6 = arith.constant dense<0.000000e+00> : vector<32xf32>
    %10 = vector.multi_reduction <add>, %9, %cst_6 [1] : vector<32x128xf32> to vector<32xf32>
    %11 = vector.shape_cast %10 : vector<32xf32> to vector<32x1xf32>
    %cst_7 = arith.constant 1.280000e+02 : f32
    %12 = vector.broadcast %cst_7 : f32 to vector<32x1xf32>
    %13 = arith.divf %11, %12 : vector<32x1xf32>
    %14 = vector.broadcast %6 : vector<32x1xf32> to vector<32x128xf32>
    %15 = arith.subf %0, %14 : vector<32x128xf32>
    %cst_8 = arith.constant 9.99999974E-6 : f32
    %16 = vector.broadcast %cst_8 : f32 to vector<32x1xf32>
    %17 = arith.addf %13, %16 : vector<32x1xf32>
    %18 = math.rsqrt %17 : vector<32x1xf32>
    %19 = vector.broadcast %18 : vector<32x1xf32> to vector<32x128xf32>
    %20 = arith.mulf %15, %19 : vector<32x128xf32>
    %21 = vector.broadcast %1 : vector<1x128xf32> to vector<32x128xf32>
    %22 = arith.mulf %20, %21 : vector<32x128xf32>
    %23 = vector.broadcast %2 : vector<1x128xf32> to vector<32x128xf32>
    %24 = arith.addf %22, %23 : vector<32x128xf32>
    %25 = tpu.iota {dimensions = array<i32: 0>} : vector<32x16xi32>
    %26 = tpu.iota {dimensions = array<i32: 1>} : vector<32x16xi32>
    %c0_i32 = arith.constant 0 : i32
    %c4_i32 = arith.constant 4 : i32
    %27 = arith.addi %c0_i32, %c4_i32 : i32
    %c1_i32 = arith.constant 1 : i32
    scf.for %arg19 = %c0_i32 to %27 step %c1_i32  : i32 {
      %79 = arith.index_cast %arg19 : i32 to index
      %c0_48 = arith.constant 0 : index
      %c0_49 = arith.constant 0 : index
      %80 = vector.load %arg4[%79, %c0_48, %c0_49] : memref<4x128x96xf32, #tpu.memory_space<vmem>>, vector<1x128x96xf32>
      %81 = vector.shape_cast %80 : vector<1x128x96xf32> to vector<128x96xf32>
      %cst_50 = arith.constant dense<0.000000e+00> : vector<32x96xf32>
      %82 = tpu.matmul %24, %81, %cst_50 {dimension_numbers = #tpu.dot_dimension_numbers<[1], [0], [0], [1], [0, 0, 1, 1], [], []>} : vector<32x128xf32>, vector<128x96xf32>, vector<32x96xf32> -> vector<32x96xf32>
      %83 = arith.index_cast %arg19 : i32 to index
      %c0_51 = arith.constant 0 : index
      %c0_52 = arith.constant 0 : index
      %84 = vector.load %arg5[%83, %c0_51, %c0_52] : memref<4x1x96xf32, #tpu.memory_space<vmem>>, vector<1x1x96xf32>
      %85 = vector.shape_cast %84 : vector<1x1x96xf32> to vector<1x96xf32>
      %86 = vector.broadcast %85 : vector<1x96xf32> to vector<32x96xf32>
      %87 = arith.addf %82, %86 : vector<32x96xf32>
      %88 = vector.extract_strided_slice %87 {offsets = [0, 0], sizes = [32, 32], strides = [1, 1]} : vector<32x96xf32> to vector<32x32xf32>
      %cst_53 = arith.constant 0.176776692 : f32
      %89 = vector.broadcast %cst_53 : f32 to vector<32x32xf32>
      %90 = arith.mulf %88, %89 : vector<32x32xf32>
      %91 = vector.extract_strided_slice %87 {offsets = [0, 32], sizes = [32, 32], strides = [1, 1]} : vector<32x96xf32> to vector<32x32xf32>
      %c0_54 = arith.constant 0 : index
      %c0_55 = arith.constant 0 : index
      %92 = vector.load %arg15[%c0_54, %c0_55] : memref<32x32xf32, #tpu.memory_space<vmem>>, vector<32x32xf32>
      tpu.vector_store %arg15[%c0_54, %c0_55], %91 {strides = array<i32>} : memref<32x32xf32, #tpu.memory_space<vmem>>, vector<32x32xf32>,
      %93 = vector.extract_strided_slice %87 {offsets = [0, 64], sizes = [32, 32], strides = [1, 1]} : vector<32x96xf32> to vector<32x32xf32>
      %c0_56 = arith.constant 0 : index
      %c0_57 = arith.constant 0 : index
      %94 = vector.load %arg16[%c0_56, %c0_57] : memref<32x32xf32, #tpu.memory_space<vmem>>, vector<32x32xf32>
      tpu.vector_store %arg16[%c0_56, %c0_57], %93 {strides = array<i32>} : memref<32x32xf32, #tpu.memory_space<vmem>>, vector<32x32xf32>,
      %cst_58 = arith.constant -1.000000e+30 : f32
      %95 = vector.broadcast %cst_58 : f32 to vector<32x1xf32>
      %cst_59 = arith.constant 0.000000e+00 : f32
      %96 = vector.broadcast %cst_59 : f32 to vector<32x1xf32>
      %cst_60 = arith.constant 0.000000e+00 : f32
      %97 = vector.broadcast %cst_60 : f32 to vector<32x32xf32>
      %c0_i32_61 = arith.constant 0 : i32
      %c2_i32_62 = arith.constant 2 : i32
      %98 = arith.addi %c0_i32_61, %c2_i32_62 : i32
      %c1_i32_63 = arith.constant 1 : i32
      %99:3 = scf.for %arg20 = %c0_i32_61 to %98 step %c1_i32_63 iter_args(%arg21 = %95, %arg22 = %96, %arg23 = %97) -> (vector<32x1xf32>, vector<32x1xf32>, vector<32x32xf32>)  : i32 {
        %c16_i32 = arith.constant 16 : i32
        %107 = arith.muli %arg20, %c16_i32 : i32
        %108 = tpu.assume_multiple %107, 16 : i32
        %109 = arith.index_cast %108 : i32 to index
        %c0_67 = arith.constant 0 : index
        %110 = vector.load %arg15[%109, %c0_67] : memref<32x32xf32, #tpu.memory_space<vmem>>, vector<16x32xf32>
        %111 = arith.index_cast %108 : i32 to index
        %c0_68 = arith.constant 0 : index
        %112 = vector.load %arg16[%111, %c0_68] : memref<32x32xf32, #tpu.memory_space<vmem>>, vector<16x32xf32>
        "tpu.trace_start"() <{level = 10 : i32, message = "qd,kd->qk"}> : () -> ()
        %cst_69 = arith.constant dense<0.000000e+00> : vector<32x16xf32>
        %113 = tpu.matmul %90, %110, %cst_69 {dimension_numbers = #tpu.dot_dimension_numbers<[1], [1], [0], [0], [0, 0, 1, 0], [], []>} : vector<32x32xf32>, vector<16x32xf32>, vector<32x16xf32> -> vector<32x16xf32>
        "tpu.trace_stop"() : () -> ()
        %114 = vector.broadcast %108 : i32 to vector<32x16xi32>
        %115 = arith.addi %26, %114 : vector<32x16xi32>
        %116 = arith.cmpi sge, %25, %115 : vector<32x16xi32>
        %cst_70 = arith.constant -1.000000e+30 : f32
        %117 = vector.broadcast %cst_70 : f32 to vector<32x16xf32>
        %118 = arith.select %116, %113, %117 : vector<32x16xi1>, vector<32x16xf32>
        %cst_71 = arith.constant dense<0xFF800000> : vector<32xf32>
        %119 = vector.multi_reduction <maximumf>, %118, %cst_71 [1] : vector<32x16xf32> to vector<32xf32>
        %120 = vector.shape_cast %119 : vector<32xf32> to vector<32x1xf32>
        %121 = arith.maximumf %arg21, %120 : vector<32x1xf32>
        %122 = arith.subf %arg21, %121 : vector<32x1xf32>
        %123 = math.exp %122 : vector<32x1xf32>
        %124 = vector.broadcast %121 : vector<32x1xf32> to vector<32x16xf32>
        %125 = arith.subf %118, %124 : vector<32x16xf32>
        %126 = math.exp %125 : vector<32x16xf32>
        %127 = arith.mulf %123, %arg22 : vector<32x1xf32>
        %cst_72 = arith.constant dense<0.000000e+00> : vector<32xf32>
        %128 = vector.multi_reduction <add>, %126, %cst_72 [1] : vector<32x16xf32> to vector<32xf32>
        %129 = vector.shape_cast %128 : vector<32xf32> to vector<32x1xf32>
        %130 = arith.addf %127, %129 : vector<32x1xf32>
        %131 = vector.broadcast %123 : vector<32x1xf32> to vector<32x32xf32>
        %132 = arith.mulf %131, %arg23 : vector<32x32xf32>
        %cst_73 = arith.constant dense<0.000000e+00> : vector<32x32xf32>
        %133 = tpu.matmul %126, %112, %cst_73 {dimension_numbers = #tpu.dot_dimension_numbers<[1], [0], [0], [1], [0, 0, 1, 1], [], []>} : vector<32x16xf32>, vector<16x32xf32>, vector<32x32xf32> -> vector<32x32xf32>
        %134 = arith.addf %132, %133 : vector<32x32xf32>
        scf.yield %121, %130, %134 : vector<32x1xf32>, vector<32x1xf32>, vector<32x32xf32>
      }
      %c2_i32_64 = arith.constant 2 : i32
      %100 = tpu.reciprocal %99#1 {approx = true} : vector<32x1xf32> -> vector<32x1xf32>
      %101 = vector.broadcast %100 : vector<32x1xf32> to vector<32x32xf32>
      %102 = arith.mulf %99#2, %101 : vector<32x32xf32>
      %103 = arith.index_cast %arg19 : i32 to index
      %c0_65 = arith.constant 0 : index
      %c0_66 = arith.constant 0 : index
      %104 = vector.load %arg17[%103, %c0_65, %c0_66] : memref<4x32x32xf32, #tpu.memory_space<vmem>>, vector<1x32x32xf32>
      %105 = vector.shape_cast %104 : vector<1x32x32xf32> to vector<32x32xf32>
      %106 = vector.shape_cast %102 : vector<32x32xf32> to vector<1x32x32xf32>
      tpu.vector_store %arg17[%103, %c0_65, %c0_66], %106 {strides = array<i32>} : memref<4x32x32xf32, #tpu.memory_space<vmem>>, vector<1x32x32xf32>,
    }
    %c4_i32_9 = arith.constant 4 : i32
    %c0_10 = arith.constant 0 : index
    %c0_11 = arith.constant 0 : index
    %c0_12 = arith.constant 0 : index
    %28 = vector.load %arg17[%c0_10, %c0_11, %c0_12] : memref<4x32x32xf32, #tpu.memory_space<vmem>>, vector<1x32x32xf32>
    %29 = vector.shape_cast %28 : vector<1x32x32xf32> to vector<32x32xf32>
    %c0_13 = arith.constant 0 : index
    %c0_14 = arith.constant 0 : index
    %30 = vector.load %arg18[%c0_13, %c0_14] : memref<32x128xf32, #tpu.memory_space<vmem>>, vector<32x32xf32>
    tpu.vector_store %arg18[%c0_13, %c0_14], %29 {strides = array<i32>} : memref<32x128xf32, #tpu.memory_space<vmem>>, vector<32x32xf32>,
    %c1 = arith.constant 1 : index
    %c0_15 = arith.constant 0 : index
    %c0_16 = arith.constant 0 : index
    %31 = vector.load %arg17[%c1, %c0_15, %c0_16] : memref<4x32x32xf32, #tpu.memory_space<vmem>>, vector<1x32x32xf32>
    %32 = vector.shape_cast %31 : vector<1x32x32xf32> to vector<32x32xf32>
    %c0_17 = arith.constant 0 : index
    %c32 = arith.constant 32 : index
    %33 = vector.load %arg18[%c0_17, %c32] : memref<32x128xf32, #tpu.memory_space<vmem>>, vector<32x32xf32>
    tpu.vector_store %arg18[%c0_17, %c32], %32 {strides = array<i32>} : memref<32x128xf32, #tpu.memory_space<vmem>>, vector<32x32xf32>,
    %c2 = arith.constant 2 : index
    %c0_18 = arith.constant 0 : index
    %c0_19 = arith.constant 0 : index
    %34 = vector.load %arg17[%c2, %c0_18, %c0_19] : memref<4x32x32xf32, #tpu.memory_space<vmem>>, vector<1x32x32xf32>
    %35 = vector.shape_cast %34 : vector<1x32x32xf32> to vector<32x32xf32>
    %c0_20 = arith.constant 0 : index
    %c64 = arith.constant 64 : index
    %36 = vector.load %arg18[%c0_20, %c64] : memref<32x128xf32, #tpu.memory_space<vmem>>, vector<32x32xf32>
    tpu.vector_store %arg18[%c0_20, %c64], %35 {strides = array<i32>} : memref<32x128xf32, #tpu.memory_space<vmem>>, vector<32x32xf32>,
    %c3 = arith.constant 3 : index
    %c0_21 = arith.constant 0 : index
    %c0_22 = arith.constant 0 : index
    %37 = vector.load %arg17[%c3, %c0_21, %c0_22] : memref<4x32x32xf32, #tpu.memory_space<vmem>>, vector<1x32x32xf32>
    %38 = vector.shape_cast %37 : vector<1x32x32xf32> to vector<32x32xf32>
    %c0_23 = arith.constant 0 : index
    %c96 = arith.constant 96 : index
    %39 = vector.load %arg18[%c0_23, %c96] : memref<32x128xf32, #tpu.memory_space<vmem>>, vector<32x32xf32>
    tpu.vector_store %arg18[%c0_23, %c96], %38 {strides = array<i32>} : memref<32x128xf32, #tpu.memory_space<vmem>>, vector<32x32xf32>,
    %c0_24 = arith.constant 0 : index
    %c0_25 = arith.constant 0 : index
    %40 = vector.load %arg18[%c0_24, %c0_25] : memref<32x128xf32, #tpu.memory_space<vmem>>, vector<32x128xf32>
    %c0_26 = arith.constant 0 : index
    %c0_27 = arith.constant 0 : index
    %41 = vector.load %arg6[%c0_26, %c0_27] : memref<128x128xf32, #tpu.memory_space<vmem>>, vector<128x128xf32>
    %cst_28 = arith.constant dense<0.000000e+00> : vector<32x128xf32>
    %42 = tpu.matmul %40, %41, %cst_28 {dimension_numbers = #tpu.dot_dimension_numbers<[1], [0], [0], [1], [0, 0, 1, 1], [], []>} : vector<32x128xf32>, vector<128x128xf32>, vector<32x128xf32> -> vector<32x128xf32>
    %c0_29 = arith.constant 0 : index
    %c0_30 = arith.constant 0 : index
    %43 = vector.load %arg7[%c0_29, %c0_30] : memref<1x128xf32, #tpu.memory_space<vmem>>, vector<1x128xf32>
    %44 = vector.broadcast %43 : vector<1x128xf32> to vector<32x128xf32>
    %45 = arith.addf %42, %44 : vector<32x128xf32>
    %46 = arith.addf %0, %45 : vector<32x128xf32>
    %c0_31 = arith.constant 0 : index
    %c0_32 = arith.constant 0 : index
    %47 = vector.load %arg8[%c0_31, %c0_32] : memref<1x128xf32, #tpu.memory_space<vmem>>, vector<1x128xf32>
    %c0_33 = arith.constant 0 : index
    %c0_34 = arith.constant 0 : index
    %48 = vector.load %arg9[%c0_33, %c0_34] : memref<1x128xf32, #tpu.memory_space<vmem>>, vector<1x128xf32>
    %cst_35 = arith.constant dense<0.000000e+00> : vector<32xf32>
    %49 = vector.multi_reduction <add>, %46, %cst_35 [1] : vector<32x128xf32> to vector<32xf32>
    %50 = vector.shape_cast %49 : vector<32xf32> to vector<32x1xf32>
    %cst_36 = arith.constant 1.280000e+02 : f32
    %51 = vector.broadcast %cst_36 : f32 to vector<32x1xf32>
    %52 = arith.divf %50, %51 : vector<32x1xf32>
    %53 = vector.broadcast %52 : vector<32x1xf32> to vector<32x128xf32>
    %54 = arith.subf %46, %53 : vector<32x128xf32>
    %55 = arith.mulf %54, %54 : vector<32x128xf32>
    %cst_37 = arith.constant dense<0.000000e+00> : vector<32xf32>
    %56 = vector.multi_reduction <add>, %55, %cst_37 [1] : vector<32x128xf32> to vector<32xf32>
    %57 = vector.shape_cast %56 : vector<32xf32> to vector<32x1xf32>
    %cst_38 = arith.constant 1.280000e+02 : f32
    %58 = vector.broadcast %cst_38 : f32 to vector<32x1xf32>
    %59 = arith.divf %57, %58 : vector<32x1xf32>
    %60 = vector.broadcast %52 : vector<32x1xf32> to vector<32x128xf32>
    %61 = arith.subf %46, %60 : vector<32x128xf32>
    %cst_39 = arith.constant 9.99999974E-6 : f32
    %62 = vector.broadcast %cst_39 : f32 to vector<32x1xf32>
    %63 = arith.addf %59, %62 : vector<32x1xf32>
    %64 = math.rsqrt %63 : vector<32x1xf32>
    %65 = vector.broadcast %64 : vector<32x1xf32> to vector<32x128xf32>
    %66 = arith.mulf %61, %65 : vector<32x128xf32>
    %67 = vector.broadcast %47 : vector<1x128xf32> to vector<32x128xf32>
    %68 = arith.mulf %66, %67 : vector<32x128xf32>
    %69 = vector.broadcast %48 : vector<1x128xf32> to vector<32x128xf32>
    %70 = arith.addf %68, %69 : vector<32x128xf32>
    %cst_40 = arith.constant 0.000000e+00 : f32
    %71 = vector.broadcast %cst_40 : f32 to vector<32x128xf32>
    %c0_i32_41 = arith.constant 0 : i32
    %c2_i32 = arith.constant 2 : i32
    %72 = arith.addi %c0_i32_41, %c2_i32 : i32
    %c1_i32_42 = arith.constant 1 : i32
    %73 = scf.for %arg19 = %c0_i32_41 to %72 step %c1_i32_42 iter_args(%arg20 = %71) -> (vector<32x128xf32>)  : i32 {
      %79 = arith.index_cast %arg19 : i32 to index
      %c0_48 = arith.constant 0 : index
      %c0_49 = arith.constant 0 : index
      %80 = vector.load %arg10[%79, %c0_48, %c0_49] : memref<2x128x256xf32, #tpu.memory_space<vmem>>, vector<1x128x256xf32>
      %81 = vector.shape_cast %80 : vector<1x128x256xf32> to vector<128x256xf32>
      %cst_50 = arith.constant dense<0.000000e+00> : vector<32x256xf32>
      %82 = tpu.matmul %70, %81, %cst_50 {dimension_numbers = #tpu.dot_dimension_numbers<[1], [0], [0], [1], [0, 0, 1, 1], [], []>} : vector<32x128xf32>, vector<128x256xf32>, vector<32x256xf32> -> vector<32x256xf32>
      %83 = arith.index_cast %arg19 : i32 to index
      %c0_51 = arith.constant 0 : index
      %c0_52 = arith.constant 0 : index
      %84 = vector.load %arg11[%83, %c0_51, %c0_52] : memref<2x1x256xf32, #tpu.memory_space<vmem>>, vector<1x1x256xf32>
      %85 = vector.shape_cast %84 : vector<1x1x256xf32> to vector<1x256xf32>
      %86 = vector.broadcast %85 : vector<1x256xf32> to vector<32x256xf32>
      %87 = arith.addf %82, %86 : vector<32x256xf32>
      %cst_53 = arith.constant 5.000000e-01 : f32
      %88 = vector.broadcast %cst_53 : f32 to vector<32x256xf32>
      %89 = arith.mulf %88, %87 : vector<32x256xf32>
      %cst_54 = arith.constant 4.471500e-02 : f32
      %90 = vector.broadcast %cst_54 : f32 to vector<32x256xf32>
      %91 = arith.mulf %90, %87 : vector<32x256xf32>
      %92 = arith.mulf %91, %87 : vector<32x256xf32>
      %93 = arith.mulf %92, %87 : vector<32x256xf32>
      %94 = arith.addf %87, %93 : vector<32x256xf32>
      %cst_55 = arith.constant 0.797884583 : f32
      %95 = vector.broadcast %cst_55 : f32 to vector<32x256xf32>
      %96 = arith.mulf %95, %94 : vector<32x256xf32>
      %97 = math.tanh %96 : vector<32x256xf32>
      %cst_56 = arith.constant 1.000000e+00 : f32
      %98 = vector.broadcast %cst_56 : f32 to vector<32x256xf32>
      %99 = arith.addf %98, %97 : vector<32x256xf32>
      %100 = arith.mulf %89, %99 : vector<32x256xf32>
      %101 = arith.index_cast %arg19 : i32 to index
      %c0_57 = arith.constant 0 : index
      %c0_58 = arith.constant 0 : index
      %102 = vector.load %arg12[%101, %c0_57, %c0_58] : memref<2x256x128xf32, #tpu.memory_space<vmem>>, vector<1x256x128xf32>
      %103 = vector.shape_cast %102 : vector<1x256x128xf32> to vector<256x128xf32>
      %cst_59 = arith.constant dense<0.000000e+00> : vector<32x128xf32>
      %104 = tpu.matmul %100, %103, %cst_59 {dimension_numbers = #tpu.dot_dimension_numbers<[1], [0], [0], [1], [0, 0, 1, 1], [], []>} : vector<32x256xf32>, vector<256x128xf32>, vector<32x128xf32> -> vector<32x128xf32>
      %105 = arith.addf %arg20, %104 : vector<32x128xf32>
      scf.yield %105 : vector<32x128xf32>
    }
    %c2_i32_43 = arith.constant 2 : i32
    %74 = arith.addf %46, %73 : vector<32x128xf32>
    %c0_44 = arith.constant 0 : index
    %c0_45 = arith.constant 0 : index
    %75 = vector.load %arg13[%c0_44, %c0_45] : memref<1x128xf32, #tpu.memory_space<vmem>>, vector<1x128xf32>
    %76 = vector.broadcast %75 : vector<1x128xf32> to vector<32x128xf32>
    %77 = arith.addf %74, %76 : vector<32x128xf32>
    %c0_46 = arith.constant 0 : index
    %c0_47 = arith.constant 0 : index
    %78 = vector.load %arg14[%c0_46, %c0_47] : memref<32x128xf32, #tpu.memory_space<vmem>>, vector<32x128xf32>
    tpu.vector_store %arg14[%c0_46, %c0_47], %77 {strides = array<i32>} : memref<32x128xf32, #tpu.memory_space<vmem>>, vector<32x128xf32>,
    return
  }
  func.func @transform_0(%arg0: i32) -> (i32, i32) {
    %c0_i32 = arith.constant 0 : i32
    %c0_i32_0 = arith.constant 0 : i32
    return %arg0, %c0_i32 : i32, i32
  }
  func.func @transform_1(%arg0: i32) -> (i32, i32) {
    %c0_i32 = arith.constant 0 : i32
    %c0_i32_0 = arith.constant 0 : i32
    %c0_i32_1 = arith.constant 0 : i32
    return %c0_i32, %c0_i32_0 : i32, i32
  }
  func.func @transform_2(%arg0: i32) -> (i32, i32) {
    %c0_i32 = arith.constant 0 : i32
    %c0_i32_0 = arith.constant 0 : i32
    %c0_i32_1 = arith.constant 0 : i32
    return %c0_i32, %c0_i32_0 : i32, i32
  }
  func.func @transform_3(%arg0: i32) -> (i32, i32, i32) {
    %c0_i32 = arith.constant 0 : i32
    %c0_i32_0 = arith.constant 0 : i32
    %c0_i32_1 = arith.constant 0 : i32
    %c0_i32_2 = arith.constant 0 : i32
    return %c0_i32, %c0_i32_0, %c0_i32_1 : i32, i32, i32
  }
  func.func @transform_4(%arg0: i32) -> (i32, i32, i32) {
    %c0_i32 = arith.constant 0 : i32
    %c0_i32_0 = arith.constant 0 : i32
    %c0_i32_1 = arith.constant 0 : i32
    %c0_i32_2 = arith.constant 0 : i32
    return %c0_i32, %c0_i32_0, %c0_i32_1 : i32, i32, i32
  }
  func.func @transform_5(%arg0: i32) -> (i32, i32) {
    %c0_i32 = arith.constant 0 : i32
    %c0_i32_0 = arith.constant 0 : i32
    %c0_i32_1 = arith.constant 0 : i32
    return %c0_i32, %c0_i32_0 : i32, i32
  }
  func.func @transform_6(%arg0: i32) -> (i32, i32) {
    %c0_i32 = arith.constant 0 : i32
    %c0_i32_0 = arith.constant 0 : i32
    %c0_i32_1 = arith.constant 0 : i32
    return %c0_i32, %c0_i32_0 : i32, i32
  }
  func.func @transform_7(%arg0: i32) -> (i32, i32) {
    %c0_i32 = arith.constant 0 : i32
    %c0_i32_0 = arith.constant 0 : i32
    %c0_i32_1 = arith.constant 0 : i32
    return %c0_i32, %c0_i32_0 : i32, i32
  }
  func.func @transform_8(%arg0: i32) -> (i32, i32) {
    %c0_i32 = arith.constant 0 : i32
    %c0_i32_0 = arith.constant 0 : i32
    %c0_i32_1 = arith.constant 0 : i32
    return %c0_i32, %c0_i32_0 : i32, i32
  }
  func.func @transform_9(%arg0: i32) -> (i32, i32, i32) {
    %c0_i32 = arith.constant 0 : i32
    %c0_i32_0 = arith.constant 0 : i32
    %c0_i32_1 = arith.constant 0 : i32
    %c0_i32_2 = arith.constant 0 : i32
    return %c0_i32, %c0_i32_0, %c0_i32_1 : i32, i32, i32
  }
  func.func @transform_10(%arg0: i32) -> (i32, i32, i32) {
    %c0_i32 = arith.constant 0 : i32
    %c0_i32_0 = arith.constant 0 : i32
    %c0_i32_1 = arith.constant 0 : i32
    %c0_i32_2 = arith.constant 0 : i32
    return %c0_i32, %c0_i32_0, %c0_i32_1 : i32, i32, i32
  }
  func.func @transform_11(%arg0: i32) -> (i32, i32, i32) {
    %c0_i32 = arith.constant 0 : i32
    %c0_i32_0 = arith.constant 0 : i32
    %c0_i32_1 = arith.constant 0 : i32
    %c0_i32_2 = arith.constant 0 : i32
    return %c0_i32, %c0_i32_0, %c0_i32_1 : i32, i32, i32
  }
  func.func @transform_12(%arg0: i32) -> (i32, i32) {
    %c0_i32 = arith.constant 0 : i32
    %c0_i32_0 = arith.constant 0 : i32
    %c0_i32_1 = arith.constant 0 : i32
    return %c0_i32, %c0_i32_0 : i32, i32
  }
  func.func @transform_13(%arg0: i32) -> (i32, i32) {
    %c0_i32 = arith.constant 0 : i32
    %c0_i32_0 = arith.constant 0 : i32
    return %arg0, %c0_i32 : i32, i32
  }
}

</mosaic_0001>

<bundles_post_ra>
// kernel: tpu_custom_call.1
= control target key start
LH: loop header
LB: loop body
LE: loop exit
PB: predicated region body
PF: predicated region fallthrough
CT: control target
= control target key end

     0   :  { %18 = vsyncpa [#allocation7], 0  ;;  %s3363_s0 = inlined_call_operand.vmem [shape: f32[64,128], index: 0, kind: input, shape index: {}]   ;;  %s3364_s1 = inlined_call_operand.vmem [shape: f32[1,128], index: 1, kind: input, shape index: {}]   ;;  %s3365_s2 = inlined_call_operand.vmem [shape: f32[1,128], index: 2, kind: input, shape index: {}]   ;;  %s3366_s3 = inlined_call_operand.vmem [shape: f32[4,128,96], index: 3, kind: input, shape index: {}]   ;;  %s3367_s4 = inlined_call_operand.vmem [shape: f32[4,1,96], index: 4, kind: input, shape index: {}]   ;;  %s3368_s5 = inlined_call_operand.vmem [shape: f32[128,128], index: 5, kind: input, shape index: {}]   ;;  %s3369_s6 = inlined_call_operand.vmem [shape: f32[1,128], index: 6, kind: input, shape index: {}]   ;;  %s3370_s7 = inlined_call_operand.vmem [shape: f32[1,128], index: 7, kind: input, shape index: {}]   ;;  %s3371_s8 = inlined_call_operand.vmem [shape: f32[1,128], index: 8, kind: input, shape index: {}]   ;;  %s3372_s9 = inlined_call_operand.vmem [shape: f32[2,128,256], index: 9, kind: input, shape index: {}]   ;;  %s3373_s10 = inlined_call_operand.vmem [shape: f32[2,1,256], index: 10, kind: input, shape index: {}]   ;;  %s3374_s11 = inlined_call_operand.hbm [shape: f32[2,256,128], index: 11, kind: input, shape index: {}]   ;;  %s3375_s12 = inlined_call_operand.vmem [shape: f32[1,128], index: 12, kind: input, shape index: {}]   ;;  %s3376_s13 = inlined_call_operand.hbm [shape: f32[64,128], index: 13, kind: output, shape index: {}]  }
   0x1   :  { %19 = vsyncpa [#allocation8], 0 }
   0x2   :  { %21 = vsyncpa [#allocation8 + $0x1], 0  ;;  %s2698_s25 = smov 0   ;;  %s2700_s26 = smov 0  }
   0x3   :  { %s2702_s27 = smov 0   ;;  %s2704_s28 = smov 0  }
   0x4 LB: > { %3380 = sst [smem:[#allocation12_spill]] %s2534_s27  ;;  %s2719_s29 = sadd.s32 4294967295, %s2538_s28   ;;  %s2538_s28 = sphi %s2704_s28, %s3404_s28   ;;  %s2534_s27 = sphi %s2702_s27, %s3406_s27   ;;  %s2530_s26 = sphi %s2700_s26, %s3408_s26   ;;  %s2526_s25 = sphi %s2698_s25, %s3407_s25  }
   0x5   : > { %s1808_s30 = sadd.s32 4294967294, %s2538_s28   ;;  %s2723_s14 = sadd.s32 1, %s2538_s28  }
   0x6   : > { %3381 = sst [smem:[#allocation13_spill]] %s2723_s14  ;;  %s312_s15 = sadd.s32 1, %s2534_s27 }
   0x7   : > { %s309_s16 = ssub.s32 %s2538_s28, %s2723_s14  ;;  %p322_p0 = scmp.ne.s32.totalorder %s2534_s27, %s2530_s26 }
   0x8   : > { %p310_p1 = scmp.eq.s32.totalorder %s309_s16, 0  ;;  %p323_p2 = scmp.eq.s32.totalorder %s2719_s29, 1 }
   0x9   : > { %p328_p3 = scmp.ne.s32.totalorder %s2530_s26, %s2526_s25  ;;  %p329_p4 = scmp.eq.s32.totalorder %s1808_s30, 1 }
   0xa   : > { %s2734_s17 = scalar_select %p310_p1, %s2534_s27, %s312_s15  }
   0xb   : > { %p2736_p5 = por %p323_p2, %p322_p0  ;;  %p2740_p6 = por %p329_p4, %p328_p3 }
   0xc   : > { %3382 = sst [smem:[#allocation14_spill]] %s2734_s17  ;;  %p1809_p7 = scmp.ge.s32.totalorder %s2538_s28, 1 }
   0xd   : > { %s3384_s19 = scalar_select %p2740_p6, 1, 0 }
   0xe   : > { %p336_p8 = scmp.lt.s32.totalorder %s2538_s28, 3  ;;  %p2118_p9 = scmp.eq.s32.totalorder %s2719_s29, 0 }
   0xf   : > { %s2616_s21 = smov [#allocation6]  }
  0x10   : > { %p2747_p10 = pnand %p1809_p7, %p336_p8  ;;  %s378_s22 = sshll.u32 %s2616_s21, 4  ;;  %s379_s22 = int_to_ptr.vmem [resolvable:$true] %s378_s22 }
  0x11   : > { %s2383_s23 = scalar_lea.vmem %s379_s22, 8192  ;;  %p2391_p3 = scmp.lt.s32.totalorder %s379_s22, %s379_s22 }
  0x12   : > { %p2110_p11 = pneg %p2747_p10  ;;  %p2384_p0 = scmp.ne.s32.totalorder %s379_s22, %s2383_s23 }
  0x13   : > { %p2392_p4 = scmp.lt.s32.totalorder %s2383_s23, %s2383_s23 }
  0x14   : > { %p2111_p12 = pnand %p2118_p9, %p2110_p11 }
  0x15   : > { %p2393_p6 = por %p2392_p4, %p2391_p3 }
  0x16   : > { %p2374_p13 = pneg %p2111_p12 }
  0x18   : > { %p2386_p1 = pnand %p2384_p0, %p2374_p13 }
  0x1a   : > { %p2387_p2 = pneg %p2386_p1 }
  0x1c   : > { %p2394_p7 = pnand %p2393_p6, %p2387_p2 }
  0x1e   : > { %2397 = shalt.err (!%p2394_p7)
}
  0x1f   : > { %s2617_s24 = smov 128   ;;  %s2618_s30 = smov 8  }
  0x20   : > { %2113 = dma.hbm_to_vmem [thread:$0]  (!%p2111_p12), %s3374_s11, 8192, %s379_s22, [#allocation7], %s2617_s24, %s2617_s24, %s2618_s30  }
  0x21   : > { %406 = sbr.rel (%p2747_p10) target bundleno = 2444 (0x98c), region = 72 }
  0x26   : > { %2517 = dma.done.wait (%p2118_p9), [#allocation7], 8192  }
  0x27   : > { %2519 = vsyncadd (%p2118_p9), [#allocation7], 4294959104  ;;  %s1815_s21 = sshll.u32 %s2719_s29, 2  ;;  %v528_v20 = vlaneseq  ;;  %s447_s27 = sand.u32 1, %s2530_s26   ;;  %v1817_v39 = vld [vmem:[%s3364_s1] ss:$0 sm:$0xff] }
  0x28   : > { %p451_p8 = scmp.lt.s32.totalorder %s1815_s21, 7  ;;  %v1818_v41 = vld [vmem:[%s3365_s2] ss:$0 sm:$0xff]  ;;  %s2819_s15 = smov 0  }
  0x29   : > { %v2785_v21 = vshrl.u32 %v528_v20, 7  ;;  %v2791_v22 = vand.u32 127, %v528_v20 }
  0x2a   : > { %s3410_s21 = smov (!%p451_p8, %s1815_s21), 7 }
  0x2b   : > { %s1816_s23 = sshll.u32 %s3410_s21, 3  ;;  %v2794_v23 = vadd.s32 8, %v2785_v21  ;;  %v2797_v24 = vadd.s32 16, %v2785_v21  ;;  %v2800_v25 = vadd.s32 24, %v2785_v21 }
  0x2c   : > { %s454_s14 = scalar_lea.vmem %s3363_s0, %s1816_s23 }
  0x2d   : > { %v2768_v0 = vld [vmem:[%s454_s14] sm:$0xff]  ;;  %v2770_v1 = vld [vmem:[%s454_s14 + $0x10] sm:$0xff]  ;;  %v2774_v2 = vld [vmem:[%s454_s14 + $0x8] sm:$0xff] }
  0x2e   : > { %463 = vadd.xlane.f32.xlu0 %v2768_v0  ;;  %467 = vadd.xlane.f32.xlu1 %v2770_v1  ;;  %v2776_v3 = vld [vmem:[%s454_s14 + $0x18] sm:$0xff]  ;;  %s2789_s14 = sshll.u32 %s447_s27, 5 }
  0x2f   : > { %s2817_s30 = scalar_lea.vmem [#allocation9], %s2789_s14 }
  0x32   : > { %465 = vadd.xlane.f32.xlu0 %v2774_v2  ;;  %469 = vadd.xlane.f32.xlu1 %v2776_v3 }
  0xb7   : > { %v464_v4 = vpop.xlane.xlu0 %463  ;;  %v468_v5 = vpop.xlane.xlu1 %467 }
  0xb8   : > { %v472_v6 = vmul.f32 0.0078125, %v464_v4  ;;  %v474_v7 = vmul.f32 0.0078125, %v468_v5 }
  0xba   : > { %v476_v8 = vsub.f32 %v2768_v0, %v472_v6  ;;  %v478_v9 = vsub.f32 %v2770_v1, %v474_v7 }
  0xbb   : > { %v466_v10 = vpop.xlane.xlu0 %465  ;;  %v470_v11 = vpop.xlane.xlu1 %469 }
  0xbc   : > { %v473_v12 = vmul.f32 0.0078125, %v466_v10  ;;  %v480_v13 = vmul.f32 %v476_v8, %v476_v8  ;;  %v475_v14 = vmul.f32 0.0078125, %v470_v11  ;;  %v482_v17 = vmul.f32 %v478_v9, %v478_v9 }
  0xbe   : > { %v477_v15 = vsub.f32 %v2774_v2, %v473_v12  ;;  %484 = vadd.xlane.f32.xlu0 %v480_v13  ;;  %v479_v16 = vsub.f32 %v2776_v3, %v475_v14 }
  0xc0   : > { %v481_v18 = vmul.f32 %v477_v15, %v477_v15  ;;  %v483_v19 = vmul.f32 %v479_v16, %v479_v16 }
  0xc2   : > { %488 = vadd.xlane.f32.xlu0 %v482_v17  ;;  %486 = vadd.xlane.f32.xlu1 %v481_v18 }
  0xc6   : > { %490 = vadd.xlane.f32.xlu1 %v483_v19 }
 0x147   : > { %v485_v26 = vpop.xlane.xlu0 %484 }
 0x148   : > { %v492_v27 = vmul.f32 0.0078125, %v485_v26 }
 0x14a   : > { %v496_v28 = vadd.f32 1e-05, %v492_v27 }
 0x14b   : > { %v487_v29 = vpop.xlane.xlu1 %486  ;;  %v489_v30 = vpop.xlane.xlu0 %488 }
 0x14c   : > { %2316 = vrsqrt.f32 %v496_v28  ;;  %v493_v31 = vmul.f32 0.0078125, %v487_v29  ;;  %v494_v32 = vmul.f32 0.0078125, %v489_v30 }
 0x14e   : > { %v497_v33 = vadd.f32 1e-05, %v493_v31  ;;  %v498_v34 = vadd.f32 1e-05, %v494_v32 }
 0x14f   : > { %v491_v35 = vpop.xlane.xlu1 %490 }
 0x150   : > { %2318 = vrsqrt.f32 %v497_v33  ;;  %v495_v36 = vmul.f32 0.0078125, %v491_v35 }
 0x151   : > { %2320 = vrsqrt.f32 %v498_v34 }
 0x152   : > { %v499_v37 = vadd.f32 1e-05, %v495_v36 }
 0x154   : > { %2322 = vrsqrt.f32 %v499_v37 }
 0x159   : > { %v2317_v38 = vpop.eup %2316 }
 0x15a   : > { %v504_v40 = vmul.f32 %v2317_v38, %v476_v8 }
 0x15c   : > { %v514_v42 = vmul.f32 %v1817_v39, %v504_v40 }
 0x15d   : > { %v2319_v43 = vpop.eup %2318 }
 0x15e   : > { %v2321_v44 = vpop.eup %2320  ;;  %v2808_v45 = vadd.f32 %v1818_v41, %v514_v42  ;;  %v505_v46 = vmul.f32 %v2319_v43, %v477_v15 }
 0x15f   : > { %v506_v47 = vmul.f32 %v2321_v44, %v478_v9 }
 0x160   : > { %v515_v48 = vmul.f32 %v1817_v39, %v505_v46 }
 0x161   : > { %v2323_v49 = vpop.eup %2322  ;;  %v516_v50 = vmul.f32 %v1817_v39, %v506_v47 }
 0x162   : > { %v2810_v51 = vadd.f32 %v1818_v41, %v515_v48  ;;  %v507_v52 = vmul.f32 %v2323_v49, %v479_v16 }
 0x163   : > { %v2812_v53 = vadd.f32 %v1818_v41, %v516_v50 }
 0x164   : > { %v517_v54 = vmul.f32 %v1817_v39, %v507_v52 }
 0x166   : > { %v2814_v55 = vadd.f32 %v1818_v41, %v517_v54 }
 0x167 LB: >> { %1976 = vmatprep.mubr.f32.mxu0 %v2808_v45  ;;  %1979 = vmatprep.mubr.f32.mxu1 %v2812_v53  ;;  %s1819_s16 = sshll.u32 %s2542_s15, 7  ;;  %s559_s22 = scalar_lea.vmem %s3367_s4, %s2542_s15  ;;  %vm672_vm0 = vcmask 261120   ;;  %v2870_v38 = vmov 0.0   ;;  %v2872_v39 = vmov 0.0   ;;  %v2874_v40 = vmov 0.0   ;;  %s2542_s15 = sphi %s2819_s15, %s540_s15  }
 0x168   : >> { %s2830_s17 = scalar_lea.vmem %s3366_s3, %s1819_s16  ;;  %v1820_v12 = vld [vmem:[%s559_s22] ss:$0 sm:$0xff]  ;;  %s2619_s24 = smov 96   ;;  %v2876_v41 = vmov 0.0   ;;  %v2878_v42 = vmov 0.0   ;;  %v2880_v43 = vmov 0.0  }
 0x169   : >> { %v558_v56 = vld [vmem:[%s2830_s17 + $0x78] sm:$0xff]  ;;  %v557_v57 = vld [vmem:[%s2830_s17 + $0x70] sm:$0xff]  ;;  %v556_v58 = vld [vmem:[%s2830_s17 + $0x68] sm:$0xff]  ;;  %s2620_s16 = smov 64   ;;  %v2882_v44 = vmov 0.0   ;;  %v2884_v46 = vmov 0.0  }
 0x16a   : >> { %1944 = vmatprep.subr.mxu0 %v558_v56  ;;  %2040 = vmatprep.subr.mxu1 %v558_v56  ;;  %v555_v59 = vld [vmem:[%s2830_s17 + $0x60] sm:$0xff]  ;;  %v554_v60 = vld [vmem:[%s2830_s17 + $0x58] sm:$0xff]  ;;  %v553_v61 = vld [vmem:[%s2830_s17 + $0x50] sm:$0xff]  ;;  %v2886_v47 = vmov -1e+30   ;;  %s2894_s21 = smov 0  }
 0x16b   : >> { %1945 = vmatpush3.msra.mxu0 %v558_v56  ;;  %2056 = vmatpush3.msra.mxu1 %v558_v56  ;;  %v552_v62 = vld [vmem:[%s2830_s17 + $0x48] sm:$0xff]  ;;  %v551_v63 = vld [vmem:[%s2830_s17 + $0x40] sm:$0xff]  ;;  %v550_v4 = vld [vmem:[%s2830_s17 + $0x38] sm:$0xff]  ;;  %v2888_v48 = vmov -1e+30  }
 0x16c   : >> { %1946 = vmatprep.subr.mxu0 %v557_v57  ;;  %2041 = vmatprep.subr.mxu1 %v557_v57  ;;  %v549_v5 = vld [vmem:[%s2830_s17 + $0x30] sm:$0xff]  ;;  %v548_v6 = vld [vmem:[%s2830_s17 + $0x28] sm:$0xff]  ;;  %v547_v7 = vld [vmem:[%s2830_s17 + $0x20] sm:$0xff]  ;;  %v2890_v49 = vmov -1e+30  }
 0x16d   : >> { %1947 = vmatpush3.msra.mxu0 %v557_v57  ;;  %2057 = vmatpush3.msra.mxu1 %v557_v57  ;;  %v546_v8 = vld [vmem:[%s2830_s17 + $0x18] sm:$0xff]  ;;  %v545_v9 = vld [vmem:[%s2830_s17 + $0x10] sm:$0xff]  ;;  %v544_v10 = vld [vmem:[%s2830_s17 + $0x8] sm:$0xff]  ;;  %v2892_v50 = vmov -1e+30  }
 0x16e   : >> { %1948 = vmatprep.subr.mxu0 %v556_v58  ;;  %2042 = vmatprep.subr.mxu1 %v556_v58  ;;  %v543_v11 = vld [vmem:[%s2830_s17] sm:$0xff] }
 0x16f   : >> { %1949 = vmatpush3.msra.mxu0 %v556_v58  ;;  %2058 = vmatpush3.msra.mxu1 %v556_v58 }
 0x170   : >> { %1950 = vmatprep.subr.mxu0 %v555_v59  ;;  %2043 = vmatprep.subr.mxu1 %v555_v59 }
 0x171   : >> { %1951 = vmatpush3.msra.mxu0 %v555_v59  ;;  %2059 = vmatpush3.msra.mxu1 %v555_v59 }
 0x172   : >> { %1952 = vmatprep.subr.mxu0 %v554_v60  ;;  %2044 = vmatprep.subr.mxu1 %v554_v60 }
 0x173   : >> { %1953 = vmatpush3.msra.mxu0 %v554_v60  ;;  %2060 = vmatpush3.msra.mxu1 %v554_v60 }
 0x174   : >> { %1954 = vmatprep.subr.mxu0 %v553_v61  ;;  %2045 = vmatprep.subr.mxu1 %v553_v61 }
 0x175   : >> { %1955 = vmatpush3.msra.mxu0 %v553_v61  ;;  %2061 = vmatpush3.msra.mxu1 %v553_v61 }
 0x176   : >> { %1956 = vmatprep.subr.mxu0 %v552_v62  ;;  %2046 = vmatprep.subr.mxu1 %v552_v62 }
 0x177   : >> { %1957 = vmatpush3.msra.mxu0 %v552_v62  ;;  %2062 = vmatpush3.msra.mxu1 %v552_v62 }
 0x178   : >> { %1958 = vmatprep.subr.mxu0 %v551_v63  ;;  %2047 = vmatprep.subr.mxu1 %v551_v63 }
 0x179   : >> { %1959 = vmatpush3.msra.mxu0 %v551_v63  ;;  %2063 = vmatpush3.msra.mxu1 %v551_v63 }
 0x17a   : >> { %1960 = vmatprep.subr.mxu0 %v550_v4  ;;  %2048 = vmatprep.subr.mxu1 %v550_v4 }
 0x17b   : >> { %1961 = vmatpush3.msra.mxu0 %v550_v4  ;;  %2064 = vmatpush3.msra.mxu1 %v550_v4 }
 0x17c   : >> { %1962 = vmatprep.subr.mxu0 %v549_v5  ;;  %2049 = vmatprep.subr.mxu1 %v549_v5 }
 0x17d   : >> { %1963 = vmatpush3.msra.mxu0 %v549_v5  ;;  %2065 = vmatpush3.msra.mxu1 %v549_v5 }
 0x17e   : >> { %1964 = vmatprep.subr.mxu0 %v548_v6  ;;  %2050 = vmatprep.subr.mxu1 %v548_v6 }
 0x17f   : >> { %1965 = vmatpush3.msra.mxu0 %v548_v6  ;;  %2066 = vmatpush3.msra.mxu1 %v548_v6 }
 0x180   : >> { %1966 = vmatprep.subr.mxu0 %v547_v7  ;;  %2051 = vmatprep.subr.mxu1 %v547_v7 }
 0x181   : >> { %1967 = vmatpush3.msra.mxu0 %v547_v7  ;;  %2067 = vmatpush3.msra.mxu1 %v547_v7 }
 0x182   : >> { %1968 = vmatprep.subr.mxu0 %v546_v8  ;;  %2052 = vmatprep.subr.mxu1 %v546_v8 }
 0x183   : >> { %1969 = vmatpush3.msra.mxu0 %v546_v8  ;;  %2068 = vmatpush3.msra.mxu1 %v546_v8 }
 0x184   : >> { %1970 = vmatprep.subr.mxu0 %v545_v9  ;;  %2053 = vmatprep.subr.mxu1 %v545_v9 }
 0x185   : >> { %1971 = vmatpush3.msra.mxu0 %v545_v9  ;;  %2069 = vmatpush3.msra.mxu1 %v545_v9 }
 0x186   : >> { %1972 = vmatprep.subr.mxu0 %v544_v10  ;;  %2054 = vmatprep.subr.mxu1 %v544_v10 }
 0x187   : >> { %1973 = vmatpush3.msra.mxu0 %v544_v10  ;;  %2070 = vmatpush3.msra.mxu1 %v544_v10 }
 0x188   : >> { %1974 = vmatprep.subr.mxu0 %v543_v11  ;;  %2055 = vmatprep.subr.mxu1 %v543_v11 }
 0x189   : >> { %1975 = vmatpush3.msra.mxu0 %v543_v11  ;;  %2071 = vmatpush3.msra.mxu1 %v543_v11 }
 0x18a   : >> { %1977 = vmatmul.mubr.f32.vlgmr.msra.gmra.mxu0 %v2810_v51  ;;  %1980 = vmatmul.mubr.f32.vlgmr.msra.gmra.mxu1 %v2814_v55 }
 0x24a   : >> { %v1978_v13 = vpop.f32.mrf.mxu0  ;;  %v1981_v14 = vpop.f32.mrf.mxu1 }
 0x24b   : >> { %v639_v15 = vadd.f32 %v1978_v13, %v1820_v12  ;;  %v649_v16 = vadd.f32 %v1981_v14, %v1820_v12 }
 0x24c   : >> { %v633_v17 = vpop.f32.mrf.mxu0  ;;  %v643_v18 = vpop.f32.mrf.mxu1 }
 0x24d   : >> { %v2854_v19 = vmul.f32 0.17677669, %v639_v15  ;;  %v2856_v20 = vmul.f32 0.17677669, %v649_v16  ;;  %v634_v26 = vadd.f32 %v1820_v12, %v633_v17  ;;  %v644_v27 = vadd.f32 %v1820_v12, %v643_v18  ;;  %666 = vrot.lane.b32.xlu1 %v649_v16, %s2619_s24  ;;  %662 = vrot.lane.b32.xlu0 %v639_v15, %s2619_s24 }
 0x24f   : >> { %v2858_v28 = vmul.f32 0.17677669, %v634_v26  ;;  %v2860_v29 = vmul.f32 0.17677669, %v644_v27 }
 0x251   : >> { %679 = vrot.lane.b32.xlu1 %v639_v15, %s2620_s16  ;;  %660 = vrot.lane.b32.xlu0 %v634_v26, %s2619_s24 }
 0x255   : >> { %664 = vrot.lane.b32.xlu1 %v644_v27, %s2619_s24  ;;  %677 = vrot.lane.b32.xlu0 %v634_v26, %s2620_s16 }
 0x259   : >> { %683 = vrot.lane.b32.xlu1 %v649_v16, %s2620_s16  ;;  %681 = vrot.lane.b32.xlu0 %v644_v27, %s2620_s16 }
 0x2bf   : >> { %v667_v30 = vpop.permute.xlu1 %666  ;;  %v663_v31 = vpop.permute.xlu0 %662 }
 0x2c0   : >> { %676 = vst.msk [vmem:[#allocation2 + $0x18] sm:$0xff] %vm672_vm0, %v667_v30  ;;  %674 = vst.msk [vmem:[#allocation2 + $0x8] sm:$0xff] %vm672_vm0, %v663_v31 }
 0x2c3   : >> { %v680_v32 = vpop.permute.xlu1 %679  ;;  %v661_v33 = vpop.permute.xlu0 %660 }
 0x2c4   : >> { %690 = vst.msk [vmem:[#allocation3 + $0x8] sm:$0xff] %vm672_vm0, %v680_v32  ;;  %673 = vst.msk [vmem:[#allocation2] sm:$0xff] %vm672_vm0, %v661_v33 }
 0x2c7   : >> { %v665_v34 = vpop.permute.xlu1 %664  ;;  %v678_v35 = vpop.permute.xlu0 %677 }
 0x2c8   : >> { %675 = vst.msk [vmem:[#allocation2 + $0x10] sm:$0xff] %vm672_vm0, %v665_v34  ;;  %689 = vst.msk [vmem:[#allocation3] sm:$0xff] %vm672_vm0, %v678_v35 }
 0x2cb   : >> { %v684_v36 = vpop.permute.xlu1 %683  ;;  %v682_v37 = vpop.permute.xlu0 %681 }
 0x2cc   : >> { %692 = vst.msk [vmem:[#allocation3 + $0x18] sm:$0xff] %vm672_vm0, %v684_v36  ;;  %691 = vst.msk [vmem:[#allocation3 + $0x10] sm:$0xff] %vm672_vm0, %v682_v37 }
 0x2cd LB: >>> { %1986 = vmatprep.mubr.msk.f32.mxu0 %vm672_vm0, %v2858_v28  ;;  %s2938_s23 = sshll.u32 %s2594_s21, 4  ;;  %vm831_vm3 = vcmask 130048   ;;  %s698_s21 = sadd.s32 1, %s2594_s21   ;;  %s2594_s21 = sphi %s2894_s21, %s698_s21   ;;  %v2590_v50 = vphi %v2892_v50, %v3398_v50   ;;  %v2586_v49 = vphi %v2890_v49, %v3397_v49   ;;  %v2582_v48 = vphi %v2888_v48, %v3396_v48   ;;  %v2578_v47 = vphi %v2886_v47, %v3395_v47   ;;  %v2574_v46 = vphi %v2884_v46, %v3394_v46   ;;  %v2570_v44 = vphi %v2882_v44, %v3393_v44   ;;  %v2566_v43 = vphi %v2880_v43, %v3392_v43   ;;  %v2562_v42 = vphi %v2878_v42, %v3391_v42   ;;  %v2558_v41 = vphi %v2876_v41, %v3390_v41   ;;  %v2554_v40 = vphi %v2874_v40, %v3389_v40   ;;  %v2550_v39 = vphi %v2872_v39, %v3388_v39   ;;  %v2546_v38 = vphi %v2870_v38, %v3387_v38  }
 0x2ce   : >>> { %s712_s17 = scalar_lea.vmem [#allocation2], %s2938_s23  ;;  %v821_v56 = vstv %s2938_s23  ;;  %s715_s14 = scalar_lea.vmem [#allocation3], %s2938_s23 }
 0x2cf   : >>> { %v714_v52 = vld [vmem:[%s712_s17 + $0x8] sm:$0xff]  ;;  %v713_v54 = vld [vmem:[%s712_s17] sm:$0xff]  ;;  %v822_v57 = vadd.s32 %v821_v56, %v2791_v22  ;;  %p3003_p6 = scmp.ge.s32.totalorder %s698_s21, 2  }
 0x2d0   : >>> { %1982 = vmatprep.subr.msk.mxu0 %vm672_vm0, %v714_v52  ;;  %s1832_s22 = sshll.u32 (%p3003_p6), %s2542_s15, 5  ;;  %s540_s15 = sadd.s32 (%p3003_p6), 1, %s2542_s15  }
 0x2d1   : >>> { %1983 = vmatpush3.xpose.msk.msra.mxu0 %vm672_vm0, %v714_v52  ;;  %vm823_vm1 = vcmp.ge.s32.totalorder %v2785_v21, %v822_v57  ;;  %vm824_vm2 = vcmp.ge.s32.totalorder %v2794_v23, %v822_v57  ;;  %vm825_vm4 = vcmp.ge.s32.totalorder %v2797_v24, %v822_v57  ;;  %vm826_vm5 = vcmp.ge.s32.totalorder %v2800_v25, %v822_v57  ;;  %s1006_s24 = scalar_lea.vmem (%p3003_p6), [#allocation4], %s1832_s22  ;;  %p537_p9 = scmp.ge.s32.totalorder (%p3003_p6), %s540_s15, 4  }
 0x2d2   : >>> { %1984 = vmatprep.subr.msk.mxu0 %vm672_vm0, %v713_v54 }
 0x2d3   : >>> { %v717_v10 = vld [vmem:[%s715_s14 + $0x8] sm:$0xff]  ;;  %v716_v11 = vld [vmem:[%s715_s14] sm:$0xff] }
 0x2d4   : >>> { %1992 = vmatprep.subr.mxu1 %v717_v10 }
 0x2d5   : >>> { %1985 = vmatpush3.xpose.msk.msra.mxu0 %vm672_vm0, %v713_v54  ;;  %1993 = vmatpush3.msra.mxu1 %v717_v10 }
 0x2d6   : >>> { %1994 = vmatprep.subr.mxu1 %v716_v11 }
 0x2d7   : >>> { %1995 = vmatpush3.msra.mxu1 %v716_v11 }
 0x2d8   : >>> { %1987 = vmatmul.mubr.msk.f32.vlgmr.msra.gmra.mxu0 %vm672_vm0, %v2854_v19 }
 0x2d9   : >>> { %1989 = vmatprep.mubr.msk.f32.mxu0 %vm672_vm0, %v2860_v29 }
 0x2dc   : >>> { %1990 = vmatmul.mubr.msk.f32.gmra.mxu0 %vm672_vm0, %v2856_v20 }
 0x398   : >>> { %v1988_v58 = vpop.f32.mrf.mxu0 }
 0x399   : >>> { %v828_v63 = vsel %vm824_vm2, %v1988_v58, -1e+30 }
 0x39a   : >>> { %v802_v59 = vpop.f32.mrf.mxu0  ;;  %v835_v6 = vsel %vm831_vm3, %v828_v63, -inf }
 0x39b   : >>> { %v827_v60 = vsel %vm823_vm1, %v802_v59, -1e+30 }
 0x39c   : >>> { %v1991_v61 = vpop.f32.mrf.mxu0  ;;  %v832_v62 = vsel %vm831_vm3, %v827_v60, -inf }
 0x39d   : >>> { %833 = vmax.xlane.f32.xlu0 %v832_v62  ;;  %v830_v8 = vsel %vm826_vm5, %v1991_v61, -1e+30 }
 0x39e   : >>> { %v812_v4 = vpop.f32.mrf.mxu0  ;;  %v841_v9 = vsel %vm831_vm3, %v830_v8, -inf }
 0x39f   : >>> { %v829_v5 = vsel %vm825_vm4, %v812_v4, -1e+30 }
 0x3a0   : >>> { %v838_v7 = vsel %vm831_vm3, %v829_v5, -inf }
 0x3a1   : >>> { %836 = vmax.xlane.f32.xlu0 %v835_v6  ;;  %839 = vmax.xlane.f32.xlu1 %v838_v7 }
 0x3a5   : >>> { %842 = vmax.xlane.f32.xlu1 %v841_v9 }
 0x426   : >>> { %v834_v12 = vpop.xlane.xlu0 %833 }
 0x427   : >>> { %v2963_v13 = vmax.f32 %v2590_v50, %v834_v12  }
 0x429   : >>> { %v848_v14 = vsub.f32 %v2590_v50, %v2963_v13  ;;  %v860_v15 = vsub.f32 %v827_v60, %v2963_v13 }
 0x42a   : >>> { %v837_v16 = vpop.xlane.xlu0 %836  ;;  %v840_v17 = vpop.xlane.xlu1 %839 }
 0x42b   : >>> { %v864_v18 = vmul.f32 1.442695, %v860_v15  ;;  %v2969_v26 = vmax.f32 %v2586_v49, %v837_v16   ;;  %v2972_v27 = vmax.f32 %v2582_v48, %v840_v17   ;;  %v852_v61 = vmul.f32 1.442695, %v848_v14 }
 0x42d   : >>> { %v849_v30 = vsub.f32 %v2586_v49, %v2969_v26  ;;  %v861_v31 = vsub.f32 %v828_v63, %v2969_v26  ;;  %v850_v32 = vsub.f32 %v2582_v48, %v2972_v27  ;;  %2324 = vpow2.f32 %v864_v18 }
 0x42e   : >>> { %v862_v33 = vsub.f32 %v829_v5, %v2972_v27  ;;  %v843_v34 = vpop.xlane.xlu1 %842 }
 0x42f   : >>> { %v866_v35 = vmul.f32 1.442695, %v861_v31  ;;  %v2981_v36 = vmax.f32 %v2578_v47, %v843_v34   ;;  %v854_v62 = vmul.f32 1.442695, %v849_v30  ;;  %v856_v63 = vmul.f32 1.442695, %v850_v32 }
 0x430   : >>> { %v868_v37 = vmul.f32 1.442695, %v862_v33 }
 0x431   : >>> { %v851_v50 = vsub.f32 %v2578_v47, %v2981_v36  ;;  %v863_v52 = vsub.f32 %v830_v8, %v2981_v36  ;;  %2326 = vpow2.f32 %v866_v35 }
 0x432   : >>> { %2328 = vpow2.f32 %v868_v37 }
 0x433   : >>> { %v870_v49 = vmul.f32 1.442695, %v863_v52  ;;  %v858_v4 = vmul.f32 1.442695, %v851_v50 }
 0x435   : >>> { %2330 = vpow2.f32 %v870_v49 }
 0x436   : >>> { %2332 = vpow2.f32 %v852_v61 }
 0x437   : >>> { %2334 = vpow2.f32 %v854_v62 }
 0x438   : >>> { %2336 = vpow2.f32 %v856_v63 }
 0x439   : >>> { %2338 = vpow2.f32 %v858_v4 }
 0x43a   : >>> { %v2325_v54 = vpop.eup %2324 }
 0x43b   : >>> { %1996 = vmatprep.mubr.msk.f32.mxu1 %vm831_vm3, %v2325_v54  ;;  %v876_v48 = vsel %vm831_vm3, %v2325_v54, 0.0 }
 0x43c   : >>> { %877 = vadd.xlane.f32.xlu0 %v876_v48  ;;  %v3396_v48 = vmov %v2972_v27 }
 0x43e   : >>> { %v2327_v56 = vpop.eup %2326 }
 0x43f   : >>> { %1997 = vmatmul.mubr.msk.f32.vlgmr.msra.gmra.mxu1 %vm831_vm3, %v2327_v56  ;;  %v879_v57 = vsel %vm831_vm3, %v2327_v56, 0.0  ;;  %v2329_v58 = vpop.eup %2328 }
 0x440   : >>> { %880 = vadd.xlane.f32.xlu1 %v879_v57  ;;  %1999 = vmatprep.mubr.msk.f32.mxu1 %vm831_vm3, %v2329_v58  ;;  %v882_v47 = vsel %vm831_vm3, %v2329_v58, 0.0 }
 0x441   : >>> { %883 = vadd.xlane.f32.xlu0 %v882_v47  ;;  %v3395_v47 = vmov %v2981_v36 }
 0x442   : >>> { %v2331_v59 = vpop.eup %2330 }
 0x443   : >>> { %2000 = vmatmul.mubr.msk.f32.gmra.mxu1 %vm831_vm3, %v2331_v59  ;;  %v885_v60 = vsel %vm831_vm3, %v2331_v59, 0.0  ;;  %v2333_v5 = vpop.eup %2332 }
 0x444   : >>> { %886 = vadd.xlane.f32.xlu1 %v885_v60  ;;  %v872_v6 = vmul.f32 %v2574_v46, %v2333_v5  ;;  %v2335_v7 = vpop.eup %2334  ;;  %v892_v35 = vmul.f32 %v2558_v41, %v2333_v5 }
 0x445   : >>> { %v2337_v10 = vpop.eup %2336  ;;  %v873_v11 = vmul.f32 %v2570_v44, %v2335_v7  ;;  %v893_v33 = vmul.f32 %v2554_v40, %v2335_v7 }
 0x446   : >>> { %v2339_v12 = vpop.eup %2338  ;;  %v874_v14 = vmul.f32 %v2566_v43, %v2337_v10  ;;  %v894_v43 = vmul.f32 %v2550_v39, %v2337_v10 }
 0x447   : >>> { %v875_v30 = vmul.f32 %v2562_v42, %v2339_v12  ;;  %v895_v44 = vmul.f32 %v2546_v38, %v2339_v12 }
 0x4c5   : >>> { %v878_v8 = vpop.xlane.xlu0 %877 }
 0x4c6   : >>> { %v888_v9 = vadd.f32 %v878_v8, %v872_v6  }
 0x4c8   : >> { %2340 = vrcp.f32 (%p3003_p6), %v888_v9 }
 0x4c9   : >>> { %v881_v15 = vpop.xlane.xlu1 %880 }
 0x4ca   : >>> { %v889_v16 = vadd.f32 %v881_v15, %v873_v11   ;;  %v884_v17 = vpop.xlane.xlu0 %883 }
 0x4cb   : >>> { %v890_v18 = vadd.f32 %v884_v17, %v874_v14  }
 0x4cc   : >> { %2342 = vrcp.f32 (%p3003_p6), %v889_v16 }
 0x4cd   : >>> { %v887_v31 = vpop.xlane.xlu1 %886  ;;  %2344 = vrcp.f32 (%p3003_p6), %v890_v18 }
 0x4ce   : >>> { %v891_v32 = vadd.f32 %v887_v31, %v875_v30  }
 0x4d0   : >>> { %v3391_v42 = vmov %v891_v32  ;;  %2346 = vrcp.f32 (%p3003_p6), %v891_v32 }
 0x4d5   : >> { %v2341_v36 = vpop.eup (%p3003_p6), %2340 }
 0x4d9   : >> { %v2343_v57 = vpop.eup (%p3003_p6), %2342 }
 0x4da   : >> { %v2345_v27 = vpop.eup (%p3003_p6), %2344 }
 0x4dd   : >> { %v2347_v60 = vpop.eup (%p3003_p6), %2346 }
 0x4ff   : >>> { %v1998_v46 = vpop.f32.mrf.mxu1 }
 0x500   : >>> { %v994_v34 = vadd.f32 %v1998_v46, %v893_v33   ;;  %v3394_v46 = vmov %v888_v9 }
 0x501   : >>> { %v974_v37 = vpop.f32.mrf.mxu1 }
 0x502   : >>> { %v993_v52 = vadd.f32 %v974_v37, %v892_v35   ;;  %v3389_v40 = vmov %v994_v34  ;;  %v1002_v59 = vmul.f32 (%p3003_p6), %v2343_v57, %v994_v34 }
 0x503   : >>> { %v2001_v50 = vpop.f32.mrf.mxu1 }
 0x504   : >>> { %v996_v54 = vadd.f32 %v2001_v50, %v895_v44   ;;  %v3390_v41 = vmov %v993_v52  ;;  %v3393_v44 = vmov %v889_v16  ;;  %v3398_v50 = vmov %v2963_v13  ;;  %697 = sbr.rel (!%p3003_p6) target bundleno = 717 (0x2cd), region = 144  ;;  %1008 = vst.msk [vmem:[%s1006_s24 + $0x8] sm:$0xff] (%p3003_p6), %vm672_vm0, %v1002_v59 }
 0x505   : >>> { %v984_v49 = vpop.f32.mrf.mxu1  ;;  %v1001_v58 = vmul.f32 (%p3003_p6), %v2341_v36, %v993_v52 }
 0x506   : >>> { %v995_v56 = vadd.f32 %v984_v49, %v894_v43   ;;  %v3387_v38 = vmov %v996_v54  ;;  %v3392_v43 = vmov %v890_v18  ;;  %v3397_v49 = vmov %v2969_v26 }
 0x507   : >> { %1007 = vst.msk [vmem:[%s1006_s24] sm:$0xff] (%p3003_p6), %vm672_vm0, %v1001_v58  ;;  %v1004_v26 = vmul.f32 (%p3003_p6), %v2347_v60, %v996_v54 }
 0x508   : >>> { %v3388_v39 = vmov %v995_v56  ;;  %v1003_v13 = vmul.f32 (%p3003_p6), %v2345_v27, %v995_v56 }
 0x509   : >> { %1010 = vst.msk [vmem:[%s1006_s24 + $0x18] sm:$0xff] %vm672_vm0, %v1004_v26  ;;  %539 = sbr.rel (!%p537_p9) target bundleno = 359 (0x167), region = 155  ;;  %s2621_s16 = smov (%p537_p9), 32   ;;  %v1117_v38 = vld [vmem:[%s3368_s5 + $0x78] sm:$0xff] (%p537_p9)  ;;  %v1116_v41 = vld [vmem:[%s3368_s5 + $0x70] sm:$0xff] (%p537_p9)  ;;  %v1115_v45 = vld [vmem:[%s3368_s5 + $0x68] sm:$0xff] (%p537_p9) }
 0x50a   : >> { %1009 = vst.msk [vmem:[%s1006_s24 + $0x10] sm:$0xff] %vm672_vm0, %v1003_v13  ;;  %2002 = vmatprep.subr.mxu0 (%p537_p9), %v1117_v38  ;;  %2072 = vmatprep.subr.mxu1 (%p537_p9), %v1117_v38  ;;  %s2622_s22 = smov (%p537_p9), 64   ;;  %v1114_v55 = vld [vmem:[%s3368_s5 + $0x60] sm:$0xff] (%p537_p9)  ;;  %v1113_v42 = vld [vmem:[%s3368_s5 + $0x58] sm:$0xff] (%p537_p9)  ;;  %v1112_v61 = vld [vmem:[%s3368_s5 + $0x50] sm:$0xff] (%p537_p9)  ;;  %s2623_s15 = smov (%p537_p9), 96  }
 0x50b   : > { %2003 = vmatpush3.msra.mxu0 (%p537_p9), %v1117_v38  ;;  %2088 = vmatpush3.msra.mxu1 (%p537_p9), %v1117_v38  ;;  %v1111_v4 = vld [vmem:[%s3368_s5 + $0x48] sm:$0xff] (%p537_p9)  ;;  %v1110_v5 = vld [vmem:[%s3368_s5 + $0x40] sm:$0xff] (%p537_p9)  ;;  %v1109_v6 = vld [vmem:[%s3368_s5 + $0x38] sm:$0xff] (%p537_p9)  ;;  %vm1041_vm6 = vcmask (%p537_p9), 523520   ;;  %vm1067_vm7 = vcmask (%p537_p9), 785920   ;;  %vm1093_vm8 = vcmask (%p537_p9), 1048320  }
 0x50c   : > { %2004 = vmatprep.subr.mxu0 (%p537_p9), %v1116_v41  ;;  %2073 = vmatprep.subr.mxu1 (%p537_p9), %v1116_v41  ;;  %v1108_v7 = vld [vmem:[%s3368_s5 + $0x30] sm:$0xff] (%p537_p9)  ;;  %v1107_v8 = vld [vmem:[%s3368_s5 + $0x28] sm:$0xff] (%p537_p9)  ;;  %v1106_v9 = vld [vmem:[%s3368_s5 + $0x20] sm:$0xff] (%p537_p9) }
 0x50d   : > { %2005 = vmatpush3.msra.mxu0 (%p537_p9), %v1116_v41  ;;  %2089 = vmatpush3.msra.mxu1 (%p537_p9), %v1116_v41  ;;  %v1105_v10 = vld [vmem:[%s3368_s5 + $0x18] sm:$0xff] (%p537_p9)  ;;  %v1104_v11 = vld [vmem:[%s3368_s5 + $0x10] sm:$0xff] (%p537_p9)  ;;  %v1103_v12 = vld [vmem:[%s3368_s5 + $0x8] sm:$0xff] (%p537_p9) }
 0x50e   : > { %2006 = vmatprep.subr.mxu0 %v1115_v45  ;;  %2074 = vmatprep.subr.mxu1 %v1115_v45  ;;  %v1102_v15 = vld [vmem:[%s3368_s5] sm:$0xff] }
 0x50f   : > { %2007 = vmatpush3.msra.mxu0 %v1115_v45  ;;  %2090 = vmatpush3.msra.mxu1 %v1115_v45  ;;  %v1833_v43 = vld [vmem:[%s3369_s6] ss:$0 sm:$0xff] }
 0x510   : > { %2008 = vmatprep.subr.mxu0 %v1114_v55  ;;  %2075 = vmatprep.subr.mxu1 %v1114_v55 }
 0x511   : > { %v1021_v19 = vld [vmem:[#allocation4 + $0x20] sm:$0xff]  ;;  %v1022_v20 = vld [vmem:[#allocation4 + $0x28] sm:$0xff]  ;;  %v1023_v28 = vld [vmem:[#allocation4 + $0x30] sm:$0xff]  ;;  %2009 = vmatpush3.msra.mxu0 %v1114_v55  ;;  %2091 = vmatpush3.msra.mxu1 %v1114_v55 }
 0x512   : > { %1029 = vrot.lane.b32.xlu0 %v1021_v19, %s2621_s16  ;;  %1031 = vrot.lane.b32.xlu1 %v1022_v20, %s2621_s16  ;;  %v1024_v29 = vld [vmem:[#allocation4 + $0x38] sm:$0xff]  ;;  %v1011_v39 = vld [vmem:[#allocation4] sm:$0xff]  ;;  %v1012_v22 = vld [vmem:[#allocation4 + $0x8] sm:$0xff] }
 0x513   : > { %v1047_v40 = vld [vmem:[#allocation4 + $0x40] sm:$0xff]  ;;  %1016 = vst.msk [vmem:[#allocation5] sm:$0xff] %vm672_vm0, %v1011_v39  ;;  %v1049_v23 = vld [vmem:[#allocation4 + $0x50] sm:$0xff]  ;;  %1017 = vst.msk [vmem:[#allocation5 + $0x8] sm:$0xff] %vm672_vm0, %v1012_v22  ;;  %2010 = vmatprep.subr.mxu0 %v1113_v42  ;;  %2076 = vmatprep.subr.mxu1 %v1113_v42 }
 0x514   : > { %v1013_v24 = vld [vmem:[#allocation4 + $0x10] sm:$0xff]  ;;  %v1014_v25 = vld [vmem:[#allocation4 + $0x18] sm:$0xff]  ;;  %v1048_v51 = vld [vmem:[#allocation4 + $0x48] sm:$0xff]  ;;  %2011 = vmatpush3.msra.mxu0 %v1113_v42  ;;  %2092 = vmatpush3.msra.mxu1 %v1113_v42 }
 0x515   : > { %1018 = vst.msk [vmem:[#allocation5 + $0x10] sm:$0xff] %vm672_vm0, %v1013_v24  ;;  %1019 = vst.msk [vmem:[#allocation5 + $0x18] sm:$0xff] %vm672_vm0, %v1014_v25  ;;  %v1050_v53 = vld [vmem:[#allocation4 + $0x58] sm:$0xff]  ;;  %v1073_v48 = vld [vmem:[#allocation4 + $0x60] sm:$0xff]  ;;  %2012 = vmatprep.subr.mxu0 %v1112_v61  ;;  %2077 = vmatprep.subr.mxu1 %v1112_v61 }
 0x516   : > { %1033 = vrot.lane.b32.xlu0 %v1023_v28, %s2621_s16  ;;  %1035 = vrot.lane.b32.xlu1 %v1024_v29, %s2621_s16  ;;  %v1075_v47 = vld [vmem:[#allocation4 + $0x70] sm:$0xff]  ;;  %v1074_v62 = vld [vmem:[#allocation4 + $0x68] sm:$0xff]  ;;  %v1076_v63 = vld [vmem:[#allocation4 + $0x78] sm:$0xff] }
 0x517   : > { %2013 = vmatpush3.msra.mxu0 %v1112_v61  ;;  %2093 = vmatpush3.msra.mxu1 %v1112_v61 }
 0x518   : > { %2014 = vmatprep.subr.mxu0 %v1111_v4  ;;  %2078 = vmatprep.subr.mxu1 %v1111_v4 }
 0x519   : > { %2015 = vmatpush3.msra.mxu0 %v1111_v4  ;;  %2094 = vmatpush3.msra.mxu1 %v1111_v4 }
 0x51a   : > { %1055 = vrot.lane.b32.xlu0 %v1047_v40, %s2622_s22  ;;  %1059 = vrot.lane.b32.xlu1 %v1049_v23, %s2622_s22 }
 0x51b   : > { %2016 = vmatprep.subr.mxu0 %v1110_v5  ;;  %2079 = vmatprep.subr.mxu1 %v1110_v5 }
 0x51c   : > { %2017 = vmatpush3.msra.mxu0 %v1110_v5  ;;  %2095 = vmatpush3.msra.mxu1 %v1110_v5 }
 0x51d   : > { %2018 = vmatprep.subr.mxu0 %v1109_v6  ;;  %2080 = vmatprep.subr.mxu1 %v1109_v6 }
 0x51e   : > { %1057 = vrot.lane.b32.xlu0 %v1048_v51, %s2622_s22  ;;  %1061 = vrot.lane.b32.xlu1 %v1050_v53, %s2622_s22 }
 0x51f   : > { %2019 = vmatpush3.msra.mxu0 %v1109_v6  ;;  %2096 = vmatpush3.msra.mxu1 %v1109_v6 }
 0x520   : > { %2020 = vmatprep.subr.mxu0 %v1108_v7  ;;  %2081 = vmatprep.subr.mxu1 %v1108_v7 }
 0x521   : > { %2021 = vmatpush3.msra.mxu0 %v1108_v7  ;;  %2097 = vmatpush3.msra.mxu1 %v1108_v7 }
 0x522   : > { %1081 = vrot.lane.b32.xlu0 %v1073_v48, %s2623_s15  ;;  %1085 = vrot.lane.b32.xlu1 %v1075_v47, %s2623_s15 }
 0x523   : > { %2022 = vmatprep.subr.mxu0 %v1107_v8  ;;  %2082 = vmatprep.subr.mxu1 %v1107_v8 }
 0x524   : > { %2023 = vmatpush3.msra.mxu0 %v1107_v8  ;;  %2098 = vmatpush3.msra.mxu1 %v1107_v8 }
 0x525   : > { %2024 = vmatprep.subr.mxu0 %v1106_v9  ;;  %2083 = vmatprep.subr.mxu1 %v1106_v9 }
 0x526   : > { %1083 = vrot.lane.b32.xlu0 %v1074_v62, %s2623_s15  ;;  %1087 = vrot.lane.b32.xlu1 %v1076_v63, %s2623_s15  ;;  %s3144_s15 = smov 0  }
 0x527   : > { %2025 = vmatpush3.msra.mxu0 %v1106_v9  ;;  %2099 = vmatpush3.msra.mxu1 %v1106_v9  ;;  %v1834_v9 = vld [vmem:[%s3370_s7] ss:$0 sm:$0xff] }
 0x528   : > { %2026 = vmatprep.subr.mxu0 %v1105_v10  ;;  %2084 = vmatprep.subr.mxu1 %v1105_v10 }
 0x529   : > { %2027 = vmatpush3.msra.mxu0 %v1105_v10  ;;  %2100 = vmatpush3.msra.mxu1 %v1105_v10 }
 0x52a   : > { %2028 = vmatprep.subr.mxu0 %v1104_v11  ;;  %2085 = vmatprep.subr.mxu1 %v1104_v11 }
 0x52b   : > { %2029 = vmatpush3.msra.mxu0 %v1104_v11  ;;  %2101 = vmatpush3.msra.mxu1 %v1104_v11 }
 0x52c   : > { %2030 = vmatprep.subr.mxu0 %v1103_v12  ;;  %2086 = vmatprep.subr.mxu1 %v1103_v12 }
 0x52d   : > { %2031 = vmatpush3.msra.mxu0 %v1103_v12  ;;  %2102 = vmatpush3.msra.mxu1 %v1103_v12  ;;  %v1835_v12 = vld [vmem:[%s3371_s8] ss:$0 sm:$0xff] }
 0x52e   : > { %2032 = vmatprep.subr.mxu0 %v1102_v15  ;;  %2087 = vmatprep.subr.mxu1 %v1102_v15 }
 0x52f   : > { %2033 = vmatpush3.msra.mxu0 %v1102_v15  ;;  %2103 = vmatpush3.msra.mxu1 %v1102_v15 }
 0x584   : > { %v1030_v16 = vpop.permute.xlu0 %1029  ;;  %v1032_v14 = vpop.permute.xlu1 %1031 }
 0x585   : > { %1042 = vst.msk [vmem:[#allocation5] sm:$0xff] %vm1041_vm6, %v1030_v16  ;;  %1043 = vst.msk [vmem:[#allocation5 + $0x8] sm:$0xff] %vm1041_vm6, %v1032_v14 }
 0x588   : > { %v1034_v17 = vpop.permute.xlu0 %1033  ;;  %v1036_v18 = vpop.permute.xlu1 %1035 }
 0x589   : > { %1044 = vst.msk [vmem:[#allocation5 + $0x10] sm:$0xff] %vm1041_vm6, %v1034_v17  ;;  %1045 = vst.msk [vmem:[#allocation5 + $0x18] sm:$0xff] %vm1041_vm6, %v1036_v18 }
 0x58c   : > { %v1056_v30 = vpop.permute.xlu0 %1055  ;;  %v1060_v31 = vpop.permute.xlu1 %1059 }
 0x58d   : > { %1068 = vst.msk [vmem:[#allocation5] sm:$0xff] %vm1067_vm7, %v1056_v30  ;;  %1070 = vst.msk [vmem:[#allocation5 + $0x10] sm:$0xff] %vm1067_vm7, %v1060_v31 }
 0x590   : > { %v1058_v32 = vpop.permute.xlu0 %1057  ;;  %v1062_v33 = vpop.permute.xlu1 %1061 }
 0x591   : > { %1069 = vst.msk [vmem:[#allocation5 + $0x8] sm:$0xff] %vm1067_vm7, %v1058_v32  ;;  %1071 = vst.msk [vmem:[#allocation5 + $0x18] sm:$0xff] %vm1067_vm7, %v1062_v33 }
 0x594   : > { %v1082_v46 = vpop.permute.xlu0 %1081  ;;  %v1086_v34 = vpop.permute.xlu1 %1085 }
 0x595   : > { %1094 = vst.msk [vmem:[#allocation5] sm:$0xff] %vm1093_vm8, %v1082_v46  ;;  %1096 = vst.msk [vmem:[#allocation5 + $0x10] sm:$0xff] %vm1093_vm8, %v1086_v34 }
 0x598   : > { %v1084_v35 = vpop.permute.xlu0 %1083  ;;  %v1088_v37 = vpop.permute.xlu1 %1087 }
 0x599   : > { %1095 = vst.msk [vmem:[#allocation5 + $0x8] sm:$0xff] %vm1093_vm8, %v1084_v35  ;;  %1097 = vst.msk [vmem:[#allocation5 + $0x18] sm:$0xff] %vm1093_vm8, %v1088_v37 }
 0x59c   : > { %v1098_v52 = vld [vmem:[#allocation5] sm:$0xff]  ;;  %v1100_v44 = vld [vmem:[#allocation5 + $0x10] sm:$0xff] }
 0x59d   : > { %2034 = vmatprep.mubr.f32.mxu0 %v1098_v52  ;;  %2037 = vmatprep.mubr.f32.mxu1 %v1100_v44  ;;  %v3136_v52 = vmov 0.0   ;;  %v3138_v44 = vmov 0.0  }
 0x5a0   : > { %v1099_v50 = vld [vmem:[#allocation5 + $0x8] sm:$0xff]  ;;  %v1101_v54 = vld [vmem:[#allocation5 + $0x18] sm:$0xff] }
 0x5a1   : > { %2035 = vmatmul.mubr.f32.vlgmr.msra.gmra.mxu0 %v1099_v50  ;;  %2038 = vmatmul.mubr.f32.vlgmr.msra.gmra.mxu1 %v1101_v54  ;;  %v3140_v50 = vmov 0.0   ;;  %v3142_v54 = vmov 0.0  }
 0x661   : > { %v2036_v49 = vpop.f32.mrf.mxu0  ;;  %v2039_v56 = vpop.f32.mrf.mxu1 }
 0x662   : > { %v1197_v36 = vadd.f32 %v2036_v49, %v1833_v43  ;;  %v1207_v26 = vadd.f32 %v2039_v56, %v1833_v43 }
 0x663   : > { %v1191_v57 = vpop.f32.mrf.mxu0  ;;  %v1201_v58 = vpop.f32.mrf.mxu1 }
 0x664   : > { %v3103_v27 = vadd.f32 %v1197_v36, %v2774_v2  ;;  %v1192_v59 = vadd.f32 %v1833_v43, %v1191_v57  ;;  %v1202_v13 = vadd.f32 %v1833_v43, %v1201_v58  ;;  %v3115_v20 = vadd.f32 %v1207_v26, %v2776_v3 }
 0x666   : > { %v3106_v60 = vadd.f32 %v1192_v59, %v2768_v0  ;;  %1218 = vadd.xlane.f32.xlu1 %v3103_v27  ;;  %v3111_v19 = vadd.f32 %v1202_v13, %v2770_v1 }
 0x668   : > { %1216 = vadd.xlane.f32.xlu0 %v3106_v60 }
 0x66c   : > { %1220 = vadd.xlane.f32.xlu0 %v3111_v19 }
 0x670   : > { %1222 = vadd.xlane.f32.xlu0 %v3115_v20 }
 0x6ef   : > { %v1219_v2 = vpop.xlane.xlu1 %1218 }
 0x6f0   : > { %v1225_v28 = vmul.f32 0.0078125, %v1219_v2 }
 0x6f1   : > { %v1217_v0 = vpop.xlane.xlu0 %1216 }
 0x6f2   : > { %v1229_v29 = vsub.f32 %v3103_v27, %v1225_v28  ;;  %v1224_v38 = vmul.f32 0.0078125, %v1217_v0 }
 0x6f4   : > { %v1228_v39 = vsub.f32 %v3106_v60, %v1224_v38  ;;  %v1233_v40 = vmul.f32 %v1229_v29, %v1229_v29 }
 0x6f5   : > { %v1221_v41 = vpop.xlane.xlu0 %1220 }
 0x6f6   : > { %v1226_v22 = vmul.f32 0.0078125, %v1221_v41  ;;  %1238 = vadd.xlane.f32.xlu0 %v1233_v40  ;;  %v1232_v1 = vmul.f32 %v1228_v39, %v1228_v39 }
 0x6f8   : > { %v1230_v23 = vsub.f32 %v3111_v19, %v1226_v22  ;;  %1236 = vadd.xlane.f32.xlu1 %v1232_v1 }
 0x6f9   : > { %v1223_v3 = vpop.xlane.xlu0 %1222 }
 0x6fa   : > { %v1227_v24 = vmul.f32 0.0078125, %v1223_v3  ;;  %v1234_v25 = vmul.f32 %v1230_v23, %v1230_v23 }
 0x6fc   : > { %v1231_v45 = vsub.f32 %v3115_v20, %v1227_v24  ;;  %1240 = vadd.xlane.f32.xlu1 %v1234_v25 }
 0x6fe   : > { %v1235_v51 = vmul.f32 %v1231_v45, %v1231_v45 }
 0x700   : > { %1242 = vadd.xlane.f32.xlu0 %v1235_v51 }
 0x77f   : > { %v1239_v53 = vpop.xlane.xlu0 %1238 }
 0x780   : > { %v1245_v55 = vmul.f32 0.0078125, %v1239_v53 }
 0x781   : > { %v1237_v42 = vpop.xlane.xlu1 %1236 }
 0x782   : > { %v1249_v48 = vadd.f32 1e-05, %v1245_v55  ;;  %v1244_v47 = vmul.f32 0.0078125, %v1237_v42 }
 0x784   : > { %2348 = vrsqrt.f32 %v1249_v48  ;;  %v1248_v61 = vadd.f32 1e-05, %v1244_v47 }
 0x785   : > { %v1241_v62 = vpop.xlane.xlu1 %1240 }
 0x786   : > { %2350 = vrsqrt.f32 %v1248_v61  ;;  %v1246_v63 = vmul.f32 0.0078125, %v1241_v62 }
 0x788   : > { %v1250_v4 = vadd.f32 1e-05, %v1246_v63 }
 0x789   : > { %v1243_v5 = vpop.xlane.xlu0 %1242 }
 0x78a   : > { %2352 = vrsqrt.f32 %v1250_v4  ;;  %v1247_v6 = vmul.f32 0.0078125, %v1243_v5 }
 0x78c   : > { %v1251_v7 = vadd.f32 1e-05, %v1247_v6 }
 0x78e   : > { %2354 = vrsqrt.f32 %v1251_v7 }
 0x791   : > { %v2349_v8 = vpop.eup %2348 }
 0x792   : > { %v1257_v10 = vmul.f32 %v2349_v8, %v1229_v29 }
 0x793   : > { %v2351_v11 = vpop.eup %2350 }
 0x794   : > { %v1267_v15 = vmul.f32 %v1834_v9, %v1257_v10  ;;  %v1256_v16 = vmul.f32 %v2351_v11, %v1228_v39 }
 0x796   : > { %v3128_v14 = vadd.f32 %v1835_v12, %v1267_v15  ;;  %v1266_v17 = vmul.f32 %v1834_v9, %v1256_v16 }
 0x797   : > { %v2353_v18 = vpop.eup %2352 }
 0x798   : > { %v3130_v30 = vadd.f32 %v1835_v12, %v1266_v17  ;;  %v1258_v31 = vmul.f32 %v2353_v18, %v1230_v23 }
 0x79a   : > { %v1268_v32 = vmul.f32 %v1834_v9, %v1258_v31 }
 0x79b   : > { %v2355_v33 = vpop.eup %2354 }
 0x79c   : > { %v3132_v46 = vadd.f32 %v1835_v12, %v1268_v32  ;;  %v1259_v34 = vmul.f32 %v2355_v33, %v1231_v45 }
 0x79e   : > { %v1269_v35 = vmul.f32 %v1834_v9, %v1259_v34 }
 0x7a0   : > { %v3134_v37 = vadd.f32 %v1835_v12, %v1269_v35 }
 0x7a1 LB: >> { %v2624_v43 = vmov 0.0   ;;  %s1846_s20 = sshll.u32 %s2614_s15, 8  ;;  %s1838_s23 = sshll.u32 %s2614_s15, 1  ;;  %s2614_s15 = sphi %s3144_s15, %s1285_s15   ;;  %v2610_v54 = vphi %v3142_v54, %v3402_v54   ;;  %v2606_v50 = vphi %v3140_v50, %v3401_v50   ;;  %v2602_v44 = vphi %v3138_v44, %v3400_v44   ;;  %v2598_v52 = vphi %v3136_v52, %v3399_v52  }
 0x7a2   : >> { %1403 = vmatprep.mubr.f32.mxu0 %v2624_v43  ;;  %s3168_s16 = scalar_lea.vmem %s3372_s9, %s1846_s20  ;;  %s3211_s21 = scalar_lea.vmem [#allocation6], %s1846_s20 }
 0x7a3   : >> { %v1324_v49 = vld [vmem:[%s3168_s16 + $0xf8] sm:$0xff]  ;;  %v1323_v56 = vld [vmem:[%s3168_s16 + $0xf0] sm:$0xff]  ;;  %v1322_v36 = vld [vmem:[%s3168_s16 + $0xe8] sm:$0xff]  ;;  %s1326_s20 = scalar_lea.vmem %s3373_s10, %s1838_s23  ;;  %s1285_s15 = sadd.s32 1, %s2614_s15  }
 0x7a4   : >> { %1339 = vmatprep.subr.mxu0 %v1324_v49  ;;  %v1321_v57 = vld [vmem:[%s3168_s16 + $0xe0] sm:$0xff]  ;;  %v1320_v58 = vld [vmem:[%s3168_s16 + $0xd8] sm:$0xff]  ;;  %v1319_v59 = vld [vmem:[%s3168_s16 + $0xd0] sm:$0xff]  ;;  %p1282_p10 = scmp.ge.s32.totalorder %s1285_s15, 2  }
 0x7a5   : >> { %1340 = vmatpush1.msra.mxu0 %v1323_v56  ;;  %v1318_v13 = vld [vmem:[%s3168_s16 + $0xc8] sm:$0xff]  ;;  %v1317_v26 = vld [vmem:[%s3168_s16 + $0xc0] sm:$0xff]  ;;  %v1316_v2 = vld [vmem:[%s3168_s16 + $0xb8] sm:$0xff]  ;;  %s1847_s15 = sshll.u32 (%p1282_p10), %s2719_s29, 9  ;;  %s1656_s17 = sshll.u32 (%p1282_p10), %s2817_s30, 4  ;;  %s3315_s17 = int_to_ptr.vmem [resolvable:$true] %s1656_s17 }
 0x7a6   : >> { %1341 = vmatprep.subr.mxu0 %v1322_v36  ;;  %v1315_v28 = vld [vmem:[%s3168_s16 + $0xb0] sm:$0xff]  ;;  %v1314_v0 = vld [vmem:[%s3168_s16 + $0xa8] sm:$0xff]  ;;  %v1313_v29 = vld [vmem:[%s3168_s16 + $0xa0] sm:$0xff]  ;;  %s3312_s23 = scalar_lea.hbm (%p1282_p10), %s3376_s13, %s1847_s15  ;;  %s3323_s29 = scalar_lea.sflag (%p1282_p10), [#allocation8], %s447_s27 }
 0x7a7   : >> { %1342 = vmatpush1.msra.mxu0 %v1321_v57  ;;  %v1312_v38 = vld [vmem:[%s3168_s16 + $0x98] sm:$0xff]  ;;  %v1311_v39 = vld [vmem:[%s3168_s16 + $0x90] sm:$0xff]  ;;  %v1310_v40 = vld [vmem:[%s3168_s16 + $0x88] sm:$0xff]  ;;  %s2398_s14 = scalar_lea.vmem (%p1282_p10), %s3315_s17, 512 }
 0x7a8   : >> { %1343 = vmatprep.subr.mxu0 %v1320_v58  ;;  %v1309_v41 = vld [vmem:[%s3168_s16 + $0x80] sm:$0xff]  ;;  %v1308_v22 = vld [vmem:[%s3168_s16 + $0x78] sm:$0xff]  ;;  %v1307_v1 = vld [vmem:[%s3168_s16 + $0x70] sm:$0xff]  ;;  %p2399_p11 = scmp.ne.s32.totalorder (%p1282_p10), %s3315_s17, %s2398_s14 }
 0x7a9   : >> { %1344 = vmatpush1.msra.mxu0 %v1319_v59  ;;  %v1306_v23 = vld [vmem:[%s3168_s16 + $0x68] sm:$0xff]  ;;  %v1305_v3 = vld [vmem:[%s3168_s16 + $0x60] sm:$0xff]  ;;  %v1304_v24 = vld [vmem:[%s3168_s16 + $0x58] sm:$0xff] }
 0x7aa   : >> { %1345 = vmatprep.subr.mxu0 %v1318_v13  ;;  %v1303_v25 = vld [vmem:[%s3168_s16 + $0x50] sm:$0xff]  ;;  %v1302_v45 = vld [vmem:[%s3168_s16 + $0x48] sm:$0xff]  ;;  %v1301_v51 = vld [vmem:[%s3168_s16 + $0x40] sm:$0xff]  ;;  %p2400_p12 = pnand (%p1282_p10), %p2399_p11, %p2736_p5 }
 0x7ab   : >> { %1346 = vmatpush1.msra.mxu0 %v1317_v26  ;;  %v1300_v53 = vld [vmem:[%s3168_s16 + $0x38] sm:$0xff]  ;;  %v1299_v55 = vld [vmem:[%s3168_s16 + $0x30] sm:$0xff]  ;;  %v1298_v42 = vld [vmem:[%s3168_s16 + $0x28] sm:$0xff] }
 0x7ac   : >> { %1347 = vmatprep.subr.mxu0 %v1316_v2  ;;  %v1297_v48 = vld [vmem:[%s3168_s16 + $0x20] sm:$0xff]  ;;  %v1296_v47 = vld [vmem:[%s3168_s16 + $0x18] sm:$0xff]  ;;  %v1295_v61 = vld [vmem:[%s3168_s16 + $0x10] sm:$0xff]  ;;  %p2401_p13 = pneg (%p1282_p10), %p2400_p12 }
 0x7ad   : >> { %1348 = vmatpush1.msra.mxu0 %v1315_v28  ;;  %v1294_v62 = vld [vmem:[%s3168_s16 + $0x8] sm:$0xff]  ;;  %v1293_v63 = vld [vmem:[%s3168_s16] sm:$0xff]  ;;  %v1533_v4 = vld [vmem:[%s3211_s21 + $0xf8] sm:$0xff] }
 0x7ae   : >> { %1349 = vmatprep.subr.mxu0 %v1314_v0  ;;  %1900 = vmatprep.subr.mxu1 %v1533_v4  ;;  %v1517_v5 = vld [vmem:[%s3211_s21 + $0x78] sm:$0xff]  ;;  %v1532_v6 = vld [vmem:[%s3211_s21 + $0xf0] sm:$0xff]  ;;  %v1531_v8 = vld [vmem:[%s3211_s21 + $0xe8] sm:$0xff] }
 0x7af   : >> { %1350 = vmatpush1.msra.mxu0 %v1313_v29  ;;  %1901 = vmatpush3.msra.mxu1 %v1517_v5  ;;  %v1516_v7 = vld [vmem:[%s3211_s21 + $0x70] sm:$0xff]  ;;  %v1515_v9 = vld [vmem:[%s3211_s21 + $0x68] sm:$0xff]  ;;  %v1530_v10 = vld [vmem:[%s3211_s21 + $0xe0] sm:$0xff] }
 0x7b0   : >> { %1351 = vmatprep.subr.mxu0 %v1312_v38  ;;  %1902 = vmatprep.subr.mxu1 %v1532_v6  ;;  %v1514_v11 = vld [vmem:[%s3211_s21 + $0x60] sm:$0xff]  ;;  %v1529_v12 = vld [vmem:[%s3211_s21 + $0xd8] sm:$0xff]  ;;  %v1528_v16 = vld [vmem:[%s3211_s21 + $0xd0] sm:$0xff] }
 0x7b1   : >> { %1352 = vmatpush1.msra.mxu0 %v1311_v39  ;;  %1903 = vmatpush3.msra.mxu1 %v1516_v7  ;;  %v1513_v15 = vld [vmem:[%s3211_s21 + $0x58] sm:$0xff]  ;;  %v1512_v17 = vld [vmem:[%s3211_s21 + $0x50] sm:$0xff]  ;;  %v1527_v18 = vld [vmem:[%s3211_s21 + $0xc8] sm:$0xff]  ;;  %v1331_v39 = vsub.s32 0, %v2785_v21 }
 0x7b2   : >> { %1353 = vmatprep.subr.mxu0 %v1310_v40  ;;  %1904 = vmatprep.subr.mxu1 %v1531_v8  ;;  %v1511_v31 = vld [vmem:[%s3211_s21 + $0x48] sm:$0xff]  ;;  %v1526_v32 = vld [vmem:[%s3211_s21 + $0xc0] sm:$0xff]  ;;  %v1525_v34 = vld [vmem:[%s3211_s21 + $0xb8] sm:$0xff] }
 0x7b3   : >> { %1354 = vmatpush1.msra.mxu0 %v1309_v41  ;;  %1905 = vmatpush3.msra.mxu1 %v1515_v9  ;;  %v1510_v33 = vld [vmem:[%s3211_s21 + $0x40] sm:$0xff]  ;;  %v1509_v35 = vld [vmem:[%s3211_s21 + $0x38] sm:$0xff]  ;;  %v1508_v49 = vld [vmem:[%s3211_s21 + $0x30] sm:$0xff]  ;;  %v1335_v41 = vsub.s32 1, %v2785_v21 }
 0x7b4   : >> { %1355 = vmatprep.subr.mxu0 %v1308_v22  ;;  %1906 = vmatprep.subr.mxu1 %v1530_v10  ;;  %v1523_v56 = vld [vmem:[%s3211_s21 + $0xa8] sm:$0xff]  ;;  %v1522_v57 = vld [vmem:[%s3211_s21 + $0xa0] sm:$0xff]  ;;  %v1521_v59 = vld [vmem:[%s3211_s21 + $0x98] sm:$0xff] }
 0x7b5   : >> { %1356 = vmatpush1.msra.mxu0 %v1307_v1  ;;  %1907 = vmatpush3.msra.mxu1 %v1514_v11  ;;  %v1507_v36 = vld [vmem:[%s3211_s21 + $0x28] sm:$0xff]  ;;  %v1506_v58 = vld [vmem:[%s3211_s21 + $0x20] sm:$0xff]  ;;  %v1505_v13 = vld [vmem:[%s3211_s21 + $0x18] sm:$0xff] }
 0x7b6   : >> { %1357 = vmatprep.subr.mxu0 %v1306_v23  ;;  %1908 = vmatprep.subr.mxu1 %v1529_v12  ;;  %v1520_v26 = vld [vmem:[%s3211_s21 + $0x90] sm:$0xff]  ;;  %v1519_v28 = vld [vmem:[%s3211_s21 + $0x88] sm:$0xff]  ;;  %v1518_v29 = vld [vmem:[%s3211_s21 + $0x80] sm:$0xff] }
 0x7b7   : >> { %1358 = vmatpush1.msra.mxu0 %v1305_v3  ;;  %1909 = vmatpush3.msra.mxu1 %v1513_v15  ;;  %v1504_v2 = vld [vmem:[%s3211_s21 + $0x10] sm:$0xff]  ;;  %v1503_v0 = vld [vmem:[%s3211_s21 + $0x8] sm:$0xff]  ;;  %v1502_v38 = vld [vmem:[%s3211_s21] sm:$0xff] }
 0x7b8   : >> { %1359 = vmatprep.subr.mxu0 %v1304_v24  ;;  %1910 = vmatprep.subr.mxu1 %v1528_v16  ;;  %v1327_v40 = vld [vmem:[%s1326_s20] sm:$0x3]  ;;  %s2625_s20 = smov (%p1282_p10), [#allocation9]  }
 0x7b9   : >> { %1360 = vmatpush1.msra.mxu0 %v1303_v25  ;;  %1911 = vmatpush3.msra.mxu1 %v1512_v17  ;;  %v1332_v22 = vrot.slane %v1327_v40, %v1331_v39  ;;  %v1336_v1 = vrot.slane %v1327_v40, %v1335_v41  ;;  %s2402_s22 = sshll.u32 (%p1282_p10), %s2625_s20, 4  ;;  %s2403_s22 = int_to_ptr.vmem [resolvable:$false] %s2402_s22 }
 0x7ba   : >> { %1361 = vmatprep.subr.mxu0 %v1302_v45  ;;  %1912 = vmatprep.subr.mxu1 %v1527_v18  ;;  %s2404_s24 = scalar_lea.vmem (%p1282_p10), %s2403_s22, 1024  ;;  %p2405_p0 = scmp.lt.s32.totalorder (%p1282_p10), %s3315_s17, %s2403_s22 }
 0x7bb   : >> { %1362 = vmatpush1.msra.mxu0 %v1301_v51  ;;  %1913 = vmatpush3.msra.mxu1 %v1511_v31  ;;  %p2406_p1 = scmp.lt.s32.totalorder (%p1282_p10), %s2404_s24, %s2398_s14 }
 0x7bc   : >> { %1363 = vmatprep.subr.mxu0 %v1300_v53  ;;  %1914 = vmatprep.subr.mxu1 %v1526_v32 }
 0x7bd   : >> { %1364 = vmatpush1.msra.mxu0 %v1299_v55  ;;  %1915 = vmatpush3.msra.mxu1 %v1510_v33  ;;  %p2407_p2 = por (%p1282_p10), %p2406_p1, %p2405_p0 }
 0x7be   : >> { %1365 = vmatprep.subr.mxu0 %v1298_v42  ;;  %1916 = vmatprep.subr.mxu1 %v1525_v34 }
 0x7bf   : >> { %1366 = vmatpush1.msra.mxu0 %v1297_v48  ;;  %1917 = vmatpush3.msra.mxu1 %v1509_v35  ;;  %p2408_p3 = pnand (%p1282_p10), %p2407_p2, %p2401_p13 }
 0x7c0   : >> { %1367 = vmatprep.subr.mxu0 %v1296_v47 }
 0x7c1   : >> { %1368 = vmatpush1.msra.mxu0 %v1295_v61 }
 0x7c2   : >> { %1369 = vmatprep.subr.mxu0 %v1294_v62 }
 0x7c3   : >> { %1370 = vmatpush1.msra.mxu0 %v1293_v63 }
 0x7c4   : >> { %1404 = vmatmul.mubr.f32.vlgmr.msra.gmra.mxu0 %v3130_v30 }
 0x7c5   : >> { %1409 = vmatprep.mubr.f32.mxu0 %v2624_v43 }
 0x7c8   : >> { %1410 = vmatmul.mubr.f32.gmra.mxu0 %v3128_v14 }
 0x7c9   : >> { %1415 = vmatprep.mubr.f32.mxu0 %v2624_v43 }
 0x7cc   : >> { %1416 = vmatmul.mubr.f32.gmra.mxu0 %v3132_v46 }
 0x7cd   : >> { %1421 = vmatprep.mubr.f32.mxu0 %v2624_v43  ;;  %v1524_v43 = vld [vmem:[%s3211_s21 + $0xb0] sm:$0xff] }
 0x7ce   : >> { %1918 = vmatprep.subr.mxu1 %v1524_v43 }
 0x7cf   : >> { %1919 = vmatpush3.msra.mxu1 %v1508_v49 }
 0x7d0   : >> { %1422 = vmatmul.mubr.f32.gmra.mxu0 %v3134_v37  ;;  %1920 = vmatprep.subr.mxu1 %v1523_v56 }
 0x7d1   : >> { %1921 = vmatpush3.msra.mxu1 %v1507_v36 }
 0x7d2   : >> { %1922 = vmatprep.subr.mxu1 %v1522_v57 }
 0x7d3   : >> { %1923 = vmatpush3.msra.mxu1 %v1506_v58 }
 0x7d4   : >> { %1924 = vmatprep.subr.mxu1 %v1521_v59 }
 0x7d5   : >> { %1925 = vmatpush3.msra.mxu1 %v1505_v13 }
 0x7d6   : >> { %1926 = vmatprep.subr.mxu1 %v1520_v26 }
 0x7d7   : >> { %1927 = vmatpush3.msra.mxu1 %v1504_v2 }
 0x7d8   : >> { %1928 = vmatprep.subr.mxu1 %v1519_v28 }
 0x7d9   : >> { %1929 = vmatpush3.msra.mxu1 %v1503_v0 }
 0x7da   : >> { %1930 = vmatprep.subr.mxu1 %v1518_v29 }
 0x7db   : >> { %1931 = vmatpush3.msra.mxu1 %v1502_v38 }
 0x884   : >> { %v1405_v23 = vpop.f32.mrf.mxu0 }
 0x885   : >> { %v3251_v3 = vadd.f32 %v1405_v23, %v1332_v22 }
 0x886   : >> { %v1407_v24 = vpop.f32.mrf.mxu0 }
 0x887   : >> { %v1436_v25 = vmul.f32 0.044715, %v3251_v3  ;;  %v1408_v45 = vadd.f32 %v1407_v24, %v1336_v1 }
 0x888   : >> { %v1411_v51 = vpop.f32.mrf.mxu0 }
 0x889   : >> { %v1444_v53 = vmul.f32 %v1436_v25, %v3251_v3  ;;  %v3255_v55 = vadd.f32 %v1411_v51, %v1332_v22  ;;  %v1437_v42 = vmul.f32 0.044715, %v1408_v45 }
 0x88a   : >> { %v1413_v48 = vpop.f32.mrf.mxu0 }
 0x88b   : >> { %v1438_v47 = vmul.f32 0.044715, %v3255_v55  ;;  %v3258_v61 = vadd.f32 %v1413_v48, %v1336_v1  ;;  %v1445_v62 = vmul.f32 %v1437_v42, %v1408_v45  ;;  %v1452_v63 = vmul.f32 %v1444_v53, %v3251_v3 }
 0x88c   : >> { %v1417_v4 = vpop.f32.mrf.mxu0 }
 0x88d   : >> { %v1446_v5 = vmul.f32 %v1438_v47, %v3255_v55  ;;  %v1439_v6 = vmul.f32 0.044715, %v3258_v61  ;;  %v3263_v7 = vadd.f32 %v1417_v4, %v1332_v22  ;;  %v1453_v8 = vmul.f32 %v1445_v62, %v1408_v45 }
 0x88e   : >> { %v1419_v9 = vpop.f32.mrf.mxu0  ;;  %v1460_v10 = vadd.f32 %v1452_v63, %v3251_v3  ;;  %v1429_v62 = vmul.f32 0.5, %v1408_v45  ;;  %v1428_v4 = vmul.f32 0.5, %v3251_v3 }
 0x88f   : >> { %v1447_v11 = vmul.f32 %v1439_v6, %v3258_v61  ;;  %v1440_v12 = vmul.f32 0.044715, %v3263_v7  ;;  %v1420_v15 = vadd.f32 %v1419_v9, %v1336_v1  ;;  %v1461_v16 = vadd.f32 %v1453_v8, %v1408_v45 }
 0x890   : >> { %v1423_v17 = vpop.f32.mrf.mxu0  ;;  %v1468_v18 = vmul.f32 0.7978846, %v1460_v10  ;;  %v1454_v31 = vmul.f32 %v1446_v5, %v3255_v55 }
 0x891   : >> { %v1448_v32 = vmul.f32 %v1440_v12, %v3263_v7  ;;  %v1441_v33 = vmul.f32 0.044715, %v1420_v15  ;;  %v3270_v34 = vadd.f32 %v1423_v17, %v1332_v22  ;;  %v1469_v35 = vmul.f32 0.7978846, %v1461_v16 }
 0x892   : >> { %v1425_v43 = vpop.f32.mrf.mxu0  ;;  %2356 = vtanh.f32 %v1468_v18  ;;  %v1455_v49 = vmul.f32 %v1447_v11, %v3258_v61  ;;  %v1462_v56 = vadd.f32 %v1454_v31, %v3255_v55  ;;  %v1431_v11 = vmul.f32 0.5, %v3258_v61 }
 0x893   : >> { %v1449_v36 = vmul.f32 %v1441_v33, %v1420_v15  ;;  %v1442_v57 = vmul.f32 0.044715, %v3270_v34  ;;  %v1426_v58 = vadd.f32 %v1425_v43, %v1336_v1  ;;  %2358 = vtanh.f32 %v1469_v35 }
 0x894   : >> { %v1463_v59 = vadd.f32 %v1455_v49, %v3258_v61  ;;  %v1470_v13 = vmul.f32 0.7978846, %v1462_v56  ;;  %v1456_v26 = vmul.f32 %v1448_v32, %v3263_v7  ;;  %v1430_v17 = vmul.f32 0.5, %v3255_v55 }
 0x895   : >> { %v1450_v2 = vmul.f32 %v1442_v57, %v3270_v34  ;;  %v1443_v28 = vmul.f32 0.044715, %v1426_v58  ;;  %v1457_v0 = vmul.f32 %v1449_v36, %v1420_v15  ;;  %v1433_v45 = vmul.f32 0.5, %v1420_v15 }
 0x896   : >> { %v1471_v29 = vmul.f32 0.7978846, %v1463_v59  ;;  %2360 = vtanh.f32 %v1470_v13  ;;  %v1464_v38 = vadd.f32 %v1456_v26, %v3263_v7  ;;  %v1432_v49 = vmul.f32 0.5, %v3263_v7 }
 0x897   : >> { %v1451_v39 = vmul.f32 %v1443_v28, %v1426_v58  ;;  %v1465_v40 = vadd.f32 %v1457_v0, %v1420_v15  ;;  %v1458_v41 = vmul.f32 %v1450_v2, %v3270_v34  ;;  %v1435_v61 = vmul.f32 0.5, %v1426_v58 }
 0x898   : >> { %2362 = vtanh.f32 %v1471_v29  ;;  %v1472_v22 = vmul.f32 0.7978846, %v1464_v38  ;;  %v1434_v13 = vmul.f32 0.5, %v3270_v34 }
 0x899   : >> { %v1473_v1 = vmul.f32 0.7978846, %v1465_v40  ;;  %v1459_v23 = vmul.f32 %v1451_v39, %v1426_v58  ;;  %v1466_v24 = vadd.f32 %v1458_v41, %v3270_v34 }
 0x89a   : >> { %2364 = vtanh.f32 %v1472_v22 }
 0x89b   : >> { %2366 = vtanh.f32 %v1473_v1  ;;  %v1467_v25 = vadd.f32 %v1459_v23, %v1426_v58  ;;  %v1474_v51 = vmul.f32 0.7978846, %v1466_v24 }
 0x89d   : >> { %v1475_v53 = vmul.f32 0.7978846, %v1467_v25  ;;  %2368 = vtanh.f32 %v1474_v51  ;;  %v1840_v25 = vld [vmem:[%s3375_s12] ss:$0 sm:$0xff] (%p1282_p10) }
 0x89f   : >> { %v2357_v42 = vpop.eup %2356  ;;  %2370 = vtanh.f32 %v1475_v53 }
 0x8a0   : >> { %v2359_v48 = vpop.eup %2358  ;;  %v1484_v47 = vadd.f32 1.0, %v2357_v42 }
 0x8a1   : >> { %v1485_v63 = vadd.f32 1.0, %v2359_v48 }
 0x8a2   : >> { %v1492_v8 = vmul.f32 %v1484_v47, %v1428_v4 }
 0x8a3   : >> { %v2361_v5 = vpop.eup %2360  ;;  %v1493_v6 = vmul.f32 %v1485_v63, %v1429_v62 }
 0x8a4   : >> { %v1486_v10 = vadd.f32 1.0, %v2361_v5 }
 0x8a5   : >> { %v2363_v9 = vpop.eup %2362  ;;  %1598 = vmatprep.mubr.f32.mxu1 %v1493_v6 }
 0x8a6   : >> { %1599 = vmatmul.mubr.f32.vlgmr.msra.gmra.mxu1 %v1492_v8  ;;  %v1487_v12 = vadd.f32 1.0, %v2363_v9  ;;  %v1494_v32 = vmul.f32 %v1486_v10, %v1430_v17 }
 0x8a7   : >> { %v2365_v16 = vpop.eup %2364 }
 0x8a8   : >> { %v2367_v18 = vpop.eup %2366  ;;  %v1495_v31 = vmul.f32 %v1487_v12, %v1431_v11  ;;  %v1488_v35 = vadd.f32 1.0, %v2365_v16 }
 0x8a9   : >> { %v1489_v33 = vadd.f32 1.0, %v2367_v18 }
 0x8aa   : >> { %v2369_v3 = vpop.eup %2368  ;;  %1603 = vmatprep.mubr.f32.mxu1 %v1495_v31  ;;  %v1496_v36 = vmul.f32 %v1488_v35, %v1432_v49 }
 0x8ab   : >> { %1604 = vmatmul.mubr.f32.gmra.mxu1 %v1494_v32  ;;  %v1497_v43 = vmul.f32 %v1489_v33, %v1433_v45  ;;  %v1490_v59 = vadd.f32 1.0, %v2369_v3 }
 0x8ac   : >> { %v2371_v56 = vpop.eup %2370 }
 0x8ad   : >> { %1608 = vmatprep.mubr.f32.mxu1 %v1497_v43  ;;  %v1491_v57 = vadd.f32 1.0, %v2371_v56  ;;  %v1498_v15 = vmul.f32 %v1490_v59, %v1434_v13 }
 0x8af   : >> { %1609 = vmatmul.mubr.f32.gmra.mxu1 %v1496_v36  ;;  %v1499_v55 = vmul.f32 %v1491_v57, %v1435_v61 }
 0x8b1   : >> { %1613 = vmatprep.mubr.f32.mxu1 %v1499_v55 }
 0x8b3   : >> { %1614 = vmatmul.mubr.f32.gmra.mxu1 %v1498_v15 }
 0x966   : >> { %v1932_v26 = vpop.f32.mrf.mxu1 }
 0x968   : >> { %v1933_v2 = vpop.f32.mrf.mxu1 }
 0x969   : >> { %v1934_v28 = vadd.f32 %v1933_v2, %v1932_v26 }
 0x96b   : >> { %v1619_v0 = vadd.f32 %v2610_v54, %v1934_v28   ;;  %v1935_v29 = vpop.f32.mrf.mxu1 }
 0x96d   : >> { %v1936_v7 = vpop.f32.mrf.mxu1  ;;  %v3402_v54 = vmov %v1619_v0 }
 0x96e   : >> { %v1937_v38 = vadd.f32 %v1936_v7, %v1935_v29  ;;  %v1623_v54 = vadd.f32 (%p1282_p10), %v1619_v0, %v3106_v60 }
 0x96f   : >> { %v1938_v39 = vpop.f32.mrf.mxu1 }
 0x970   : >> { %v1620_v58 = vadd.f32 %v2606_v50, %v1937_v38   ;;  %v1634_v21 = vadd.f32 (%p1282_p10), %v1840_v25, %v1623_v54 }
 0x971   : >> { %v1939_v40 = vpop.f32.mrf.mxu1 }
 0x972   : >> { %v1940_v41 = vadd.f32 %v1939_v40, %v1938_v39  ;;  %v3401_v50 = vmov %v1620_v58  ;;  %v1624_v51 = vadd.f32 (%p1282_p10), %v1620_v58, %v3103_v27  ;;  %1638 = vst [vmem:[%s2817_s30] sm:$0xff] (%p1282_p10), %v1634_v21 }
 0x973   : >> { %v1941_v22 = vpop.f32.mrf.mxu1 }
 0x974   : >> { %v1621_v1 = vadd.f32 %v2602_v44, %v1940_v41   ;;  %v1635_v60 = vadd.f32 (%p1282_p10), %v1840_v25, %v1624_v51 }
 0x975   : >> { %v1942_v34 = vpop.f32.mrf.mxu1 }
 0x976   : >> { %v1943_v23 = vadd.f32 %v1942_v34, %v1941_v22  ;;  %v3400_v44 = vmov %v1621_v1  ;;  %1284 = sbr.rel (!%p1282_p10) target bundleno = 1953 (0x7a1), region = 166  ;;  %v1625_v53 = vadd.f32 (%p1282_p10), %v1621_v1, %v3111_v19  ;;  %1639 = vst [vmem:[%s2817_s30 + $0x8] sm:$0xff] (%p1282_p10), %v1635_v60 }
 0x978   : >> { %v1622_v24 = vadd.f32 %v2598_v52, %v1943_v23   ;;  %v1636_v14 = vadd.f32 (%p1282_p10), %v1840_v25, %v1625_v53 }
 0x97a   : >> { %v3399_v52 = vmov %v1622_v24  ;;  %v1626_v42 = vadd.f32 (%p1282_p10), %v1622_v24, %v3115_v20  ;;  %1640 = vst [vmem:[%s2817_s30 + $0x10] sm:$0xff] (%p1282_p10), %v1636_v14 }
 0x97c   : > { %v1637_v30 = vadd.f32 %v1840_v25, %v1626_v42 }
 0x97e   : > { %1641 = vst [vmem:[%s2817_s30 + $0x18] sm:$0xff] %v1637_v30 }
 0x97f   : > { %2411 = shalt.err (!%p2408_p3)
}
 0x980   : > { %s2412_s27 = scalar_lea.hbm %s3312_s23, 512  ;;  %s2416_s16 = scalar_lea.hbm %s3376_s13, 1024 }
 0x981   : > { %p2413_p4 = scmp.ne.s32.totalorder %s3312_s23, %s2412_s27  ;;  %p2417_p6 = scmp.lt.s32.totalorder %s3312_s23, %s3376_s13 }
 0x982   : > { %p2418_p9 = scmp.lt.s32.totalorder %s2416_s16, %s2412_s27 }
 0x983   : > { %p2414_p7 = pnand %p2413_p4, %p2736_p5 }
 0x984   : > { %p2419_p10 = por %p2418_p9, %p2417_p6 }
 0x985   : > { %p2415_p8 = pneg %p2414_p7 }
 0x987   : > { %p2420_p11 = pnand %p2419_p10, %p2415_p8 }
 0x989   : > { %2423 = shalt.err (!%p2420_p11)
}
 0x98a   : > { %s2626_s14 = smov 128   ;;  %s2627_s22 = smov 8  }
 0x98b   : > { %2108 = dma.vmem_to_hbm [thread:$0]  (%p2736_p5), %s3315_s17, 512, %s3312_s23, %s3323_s29, %s2626_s14, %s2626_s14, %s2627_s22  }
 0x98c PF: > { %p2120_p12 = scmp.ge.s32.totalorder %s2538_s28, 2  ;;  %s1671_s24 = sand.u32 1, %s2526_s25  }
 0x98d   : > { %p3403_p13 = scmp.ne.s32.totalorder %s3384_s19, 0  ;;  %s1672_s27 = scalar_lea.sflag [#allocation8], %s1671_s24 }
 0x98f   : > { %p2115_p0 = pnand %p2120_p12, %p3403_p13 }
 0x991   : > { %p2116_p1 = pneg %p2115_p0 }
 0x993   : > { %2521 = dma.done.wait (%p2116_p1), %s1672_s27, 512  }
 0x994   : > { %2523 = vsyncadd (%p2116_p1), %s1672_s27, 4294966784  ;;  %s3404_s28 = sld [smem:[#allocation13_spill]]  ;;  %s3407_s25 = smov %s2530_s26 }
 0x995   : > { %s3405_s30 = sld [smem:[#allocation12_spill]] }
 0x996   : > { %s3406_s27 = sld [smem:[#allocation14_spill]] }
 0x99a   : > { %p24_p2 = scmp.ge.s32.totalorder %s3404_s28, 4  }
 0x99b   : > { %s3408_s26 = smov %s3405_s30 }
 0x99c   :  { %26 = sbr.rel (!%p24_p2) target bundleno = 4 (0x4), region = 177 }
 0x9a1   :  { %1677 = vsyncpa [#allocation7], 1 }
 0x9a2   :  { %1679 = vsyncpa [#allocation7 + $0x1], 1 }
 0x9a3   :  { %1680 = vsyncpa [#allocation8], 1 }
 0x9a4   :  { %1682 = vsyncpa [#allocation8 + $0x1], 1 }

</bundles_post_ra>
